<compile_context>
chip_gen: v6e
topology: v6e:2x2x1
jax: 0.10.0
libtpu: 0.0.40
codegen_flags: <defaults>
</compile_context>

<pallas_src>
import functools

import jax
import jax.numpy as jnp
import numpy as np
from jax import lax
from jax.experimental import pallas as pl
from jax.experimental.pallas import tpu as pltpu

DILATIONS = (1, 2, 4, 8, 16)  # padding == dilation for every layer ("same" length)


def tdnn_kernel(x_ref, w1, b1, w2, b2, w3, b3, w4, b4, w5, b5, out_ref, *, T):
    """One grid step: Bt batch elements laid out as a (Bt*T, C) time-major slab.

    x_ref : (Bt*T, idim) bf16
    w*    : (3, Cin, Cout) bf16 (tap-major), b*: (1, Cout) f32
    out_ref: (Bt, odim) f32
    """
    R = x_ref.shape[0]          # Bt * T rows
    Bt = R // T
    h = x_ref[...]              # (R, idim) bf16, already lane-ordered

    # Local time index of every slab row (hoisted; reused by all layers' masks).
    row = lax.broadcasted_iota(jnp.int32, (R, 1), 0) % T

    def conv_tanh(h_bf, w_ref, b_ref, d):
        # Centre tap x[t].
        y = jnp.dot(h_bf, w_ref[1], preferred_element_type=jnp.float32) + b_ref[...]
        if d < T:  # side taps only contribute when they can land inside the sequence
            # Mask (cheap bf16 selects) the source rows whose shifted destination falls
            # in the conv zero-padding — this also zeroes cross-batch-element and
            # slab-wraparound rows — then shift the matmul OUTPUTS with an XLU roll.
            h_lo = jnp.where(row < T - d, h_bf, 0).astype(h_bf.dtype)  # feeds tap x[t-d]
            h_hi = jnp.where(row >= d, h_bf, 0).astype(h_bf.dtype)     # feeds tap x[t+d]
            y0 = jnp.dot(h_lo, w_ref[0], preferred_element_type=jnp.float32)
            y2 = jnp.dot(h_hi, w_ref[2], preferred_element_type=jnp.float32)
            y = y + pltpu.roll(y0, shift=d, axis=0)        # s0[r] = y0[r-d]
            y = y + pltpu.roll(y2, shift=R - d, axis=0)    # s2[r] = y2[r+d]
        return jnp.tanh(y).astype(jnp.bfloat16)

    o = conv_tanh(h, w1, b1, DILATIONS[0])
    o = conv_tanh(o, w2, b2, DILATIONS[1])
    o = conv_tanh(o, w3, b3, DILATIONS[2])
    o = conv_tanh(o, w4, b4, DILATIONS[3])

    # Layer 5 is linear, so commute the temporal mean through it:
    #   mean_t conv5(h4)[t] == (S_lo @ w5[0] + S_full @ w5[1] + S_hi @ w5[2]) / T + b5
    # where S_* are time-sums of h4 over each tap's valid source window.
    d = DILATIONS[4]
    C = o.shape[1]
    of = o.astype(jnp.float32)                                   # (R, hdim) f32
    s_full = jnp.sum(of.reshape(Bt, T, C), axis=1)               # all t
    s_lo = jnp.sum(jnp.where(row <= T - 1 - d, of, 0.0).reshape(Bt, T, C), axis=1)  # tap x[t-d]
    s_hi = jnp.sum(jnp.where(row >= d, of, 0.0).reshape(Bt, T, C), axis=1)          # tap x[t+d]
    acc = (jnp.dot(s_lo, w5[0].astype(jnp.float32), preferred_element_type=jnp.float32)
           + jnp.dot(s_full, w5[1].astype(jnp.float32), preferred_element_type=jnp.float32)
           + jnp.dot(s_hi, w5[2].astype(jnp.float32), preferred_element_type=jnp.float32))
    out_ref[...] = acc * (1.0 / T) + b5[...]


def _min_grid_steps(B):
    """v7x-like chips have 2 TensorCores; give each one a 'parallel' grid step."""
    if B < 2:
        return 1
    try:
        kind = jax.devices()[0].device_kind.lower()
    except Exception:
        return 1
    return 2 if "v7" in kind else 1


def _pick_bt(B, T, idim, hdim, vmem_budget_bytes, min_steps):
    """Largest divisor Bt of B whose (Bt*T)-row slab fits the VMEM budget, leaves at
    least `min_steps` grid steps, and (preferably) keeps blocks on aligned tiles."""
    # Rough live bytes per slab row: double-buffered bf16 input block, bf16 activation
    # + two masked bf16 copies, and a few (R, hdim) f32 temporaries.
    bytes_per_row = idim * 2 * 2 + hdim * (2 * 3 + 4 * 4)
    bt_cap = max(1, vmem_budget_bytes // max(bytes_per_row * T, 1))
    divisors = [bt for bt in range(1, B + 1) if B % bt == 0]
    cands = [bt for bt in divisors if bt <= bt_cap and (B // bt) >= min_steps] or [1]
    # Prefer full-array blocks or bf16-(16,128)-aligned sublane counts.
    aligned = [bt for bt in cands if bt == B or (bt * T) % 16 == 0]
    return max(aligned) if aligned else max(cands)


def tdnn_forward(x_nct, params, batch_tile=None, vmem_budget_bytes=24 << 20):
    """x_nct: (B, idim, T) like PyTorch NCL.  Returns (B, odim) f32."""
    B, idim, T = x_nct.shape
    hdim = params[0][0].shape[2]
    odim = params[-1][0].shape[2]

    if batch_tile is None:
        Bt = _pick_bt(B, T, idim, hdim, vmem_budget_bytes, _min_grid_steps(B))
    else:
        Bt = batch_tile
    assert B % Bt == 0, "batch tile must divide B"
    grid = (B // Bt,)

    # Time-major, channels-last, batch folded into rows; bf16 feeds the MXU.
    x2d = jnp.transpose(x_nct, (0, 2, 1)).reshape(B * T, idim).astype(jnp.bfloat16)

    flat_params = []
    in_specs = [pl.BlockSpec((Bt * T, idim), lambda g: (g, 0))]
    weight_bytes = 0
    for w, bias in params:
        w = w.astype(jnp.bfloat16)
        bias = bias.astype(jnp.float32)
        # Constant index_map: never re-fetched across grid steps.
        in_specs.append(pl.BlockSpec(w.shape, lambda g: (0, 0, 0)))
        in_specs.append(pl.BlockSpec(bias.shape, lambda g: (0, 0)))
        flat_params += [w, bias]
        weight_bytes += w.size * 2 + bias.size * 4

    # Explicit scoped-VMEM limit: ~2x the per-step live estimate, kept below v7x's
    # 64 MiB physical VMEM (fits v5e/v6e's 128 MiB trivially).
    step_bytes = Bt * T * (idim * 2 * 2 + hdim * (2 * 3 + 4 * 4)) + 2 * weight_bytes
    vmem_limit = int(min(48 << 20, max(32 << 20, 2 * step_bytes)))

    out = pl.pallas_call(
        functools.partial(tdnn_kernel, T=T),
        out_shape=jax.ShapeDtypeStruct((B, odim), jnp.float32),
        grid_spec=pltpu.PrefetchScalarGridSpec(
            num_scalar_prefetch=0,
            grid=grid,
            in_specs=in_specs,
            out_specs=pl.BlockSpec((Bt, odim), lambda g: (g, 0)),
        ),
        compiler_params=pltpu.CompilerParams(
            dimension_semantics=("parallel",),
            vmem_limit_bytes=vmem_limit,
        ),
    )(x2d, *flat_params)
    return out


def init_params(key, idim, odim, hdim):
    """Deterministic synthetic params. Weights stored tap-major: (3, Cin, Cout)."""
    dims = [(idim, hdim), (hdim, hdim), (hdim, hdim), (hdim, hdim), (hdim, odim)]
    params = []
    for cin, cout in dims:
        kw, kb, key = jax.random.split(key, 3)
        w = jax.random.normal(kw, (3, cin, cout), jnp.float32) / jnp.sqrt(3.0 * cin)
        b = jax.random.uniform(kb, (1, cout), jnp.float32, -0.1, 0.1)
        params.append((w, b))
    return params


def ref_forward(x_nct, params, compute_dtype=jnp.float32):
    """Pure-JAX reference replicating the PyTorch forward.

    compute_dtype=bf16 emulates the kernel's MXU numerics (bf16 operands,
    f32 accumulation) for an apples-to-apples comparison.
    """
    h = x_nct
    for i, (w, bias) in enumerate(params):
        d = DILATIONS[i]
        w_oik = jnp.transpose(w, (2, 1, 0)).astype(compute_dtype).astype(jnp.float32)
        h_in = h.astype(compute_dtype).astype(jnp.float32)
        h = lax.conv_general_dilated(
            h_in, w_oik, window_strides=(1,), padding=[(d, d)], rhs_dilation=(d,),
            dimension_numbers=("NCH", "OIH", "NCH"))
        h = h + bias.reshape(1, -1, 1)
        if i < 4:
            h = jnp.tanh(h)
    return jnp.mean(h, axis=2)


if __name__ == "__main__":
    key = jax.random.PRNGKey(0)
    kx, kp = jax.random.split(key)
    B, idim, odim, hdim, T = 2, 8, 16, 32, 64  # small shapes (module default hdim=192)
    x = jax.random.normal(kx, (B, idim, T), jnp.float32)  # PyTorch NCL layout
    params = init_params(kp, idim, odim, hdim)

    out = jax.block_until_ready(tdnn_forward(x, params))

    # Strict check vs a reference using the kernel's bf16-operand / f32-accum numerics.
    ref_bf16 = ref_forward(x, params, compute_dtype=jnp.bfloat16)
    np.testing.assert_allclose(np.asarray(out), np.asarray(ref_bf16), atol=1e-2, rtol=1e-2)
    # Looser sanity check vs the full-f32 reference (bf16 quantization only).
    ref_f32 = ref_forward(x, params)
    np.testing.assert_allclose(np.asarray(out), np.asarray(ref_f32), atol=5e-2, rtol=5e-2)
    print("KERNEL_OK")
</pallas_src>

<mosaic_0001>
module attributes {stable_mosaic.version = 11 : i64} {
  func.func @tdnn_kernel(%arg0: i32, %arg1: memref<128x8xbf16, #tpu.memory_space<vmem>>, %arg2: memref<3x8x32xbf16, #tpu.memory_space<vmem>>, %arg3: memref<1x32xf32, #tpu.memory_space<vmem>>, %arg4: memref<3x32x32xbf16, #tpu.memory_space<vmem>>, %arg5: memref<1x32xf32, #tpu.memory_space<vmem>>, %arg6: memref<3x32x32xbf16, #tpu.memory_space<vmem>>, %arg7: memref<1x32xf32, #tpu.memory_space<vmem>>, %arg8: memref<3x32x32xbf16, #tpu.memory_space<vmem>>, %arg9: memref<1x32xf32, #tpu.memory_space<vmem>>, %arg10: memref<3x32x16xbf16, #tpu.memory_space<vmem>>, %arg11: memref<1x16xf32, #tpu.memory_space<vmem>>, %arg12: memref<2x16xf32, #tpu.memory_space<vmem>>) attributes {dimension_semantics = [#tpu.dimension_semantics<parallel>], iteration_bounds = array<i64: 1>, scalar_prefetch = 0 : i64, scratch_operands = 0 : i64, tpu.core_type = #tpu.core_type<tc>, window_params = [{transform_indices = @transform_0, window_bounds = array<i64: 128, 8>}, {pipeline_mode = #tpu.pipeline_mode<synchronous>, transform_indices = @transform_1, window_bounds = array<i64: 3, 8, 32>}, {pipeline_mode = #tpu.pipeline_mode<synchronous>, transform_indices = @transform_2, window_bounds = array<i64: 1, 32>}, {pipeline_mode = #tpu.pipeline_mode<synchronous>, transform_indices = @transform_3, window_bounds = array<i64: 3, 32, 32>}, {pipeline_mode = #tpu.pipeline_mode<synchronous>, transform_indices = @transform_4, window_bounds = array<i64: 1, 32>}, {pipeline_mode = #tpu.pipeline_mode<synchronous>, transform_indices = @transform_5, window_bounds = array<i64: 3, 32, 32>}, {pipeline_mode = #tpu.pipeline_mode<synchronous>, transform_indices = @transform_6, window_bounds = array<i64: 1, 32>}, {pipeline_mode = #tpu.pipeline_mode<synchronous>, transform_indices = @transform_7, window_bounds = array<i64: 3, 32, 32>}, {pipeline_mode = #tpu.pipeline_mode<synchronous>, transform_indices = @transform_8, window_bounds = array<i64: 1, 32>}, {pipeline_mode = #tpu.pipeline_mode<synchronous>, transform_indices = @transform_9, window_bounds = array<i64: 3, 32, 16>}, {pipeline_mode = #tpu.pipeline_mode<synchronous>, transform_indices = @transform_10, window_bounds = array<i64: 1, 16>}, {transform_indices = @transform_11, window_bounds = array<i64: 2, 16>}]} {
    %c0 = arith.constant 0 : index
    %c0_0 = arith.constant 0 : index
    %0 = vector.load %arg1[%c0, %c0_0] : memref<128x8xbf16, #tpu.memory_space<vmem>>, vector<128x8xbf16>
    %1 = tpu.iota {dimensions = array<i32: 0>} : vector<128x1xi32>
    %c64_i32 = arith.constant 64 : i32
    %c0_i32 = arith.constant 0 : i32
    %2 = arith.cmpi eq, %c64_i32, %c0_i32 : i32
    %c1_i32 = arith.constant 1 : i32
    %3 = arith.select %2, %c1_i32, %c64_i32 : i32
    %4 = vector.broadcast %3 : i32 to vector<128x1xi32>
    %5 = arith.remsi %1, %4 : vector<128x1xi32>
    %c0_i32_1 = arith.constant 0 : i32
    %6 = vector.broadcast %c0_i32_1 : i32 to vector<128x1xi32>
    %7 = arith.cmpi ne, %5, %6 : vector<128x1xi32>
    %c0_i32_2 = arith.constant 0 : i32
    %8 = vector.broadcast %c0_i32_2 : i32 to vector<128x1xi32>
    %9 = arith.cmpi slt, %5, %8 : vector<128x1xi32>
    %c0_i32_3 = arith.constant 0 : i32
    %10 = arith.cmpi slt, %3, %c0_i32_3 : i32
    %11 = vector.broadcast %10 : i1 to vector<128x1xi1>
    %12 = vector.broadcast %11 : vector<128x1xi1> to vector<128x1xi1>
    %13 = arith.xori %9, %12 : vector<128x1xi1>
    %14 = arith.andi %13, %7 : vector<128x1xi1>
    %15 = vector.broadcast %3 : i32 to vector<128x1xi32>
    %16 = arith.addi %5, %15 : vector<128x1xi32>
    %17 = arith.select %14, %16, %5 : vector<128x1xi1>, vector<128x1xi32>
    %c1 = arith.constant 1 : index
    %c0_4 = arith.constant 0 : index
    %c0_5 = arith.constant 0 : index
    %18 = vector.load %arg2[%c1, %c0_4, %c0_5] : memref<3x8x32xbf16, #tpu.memory_space<vmem>>, vector<1x8x32xbf16>
    %19 = vector.shape_cast %18 : vector<1x8x32xbf16> to vector<8x32xbf16>
    %cst = arith.constant dense<0.000000e+00> : vector<128x32xf32>
    %20 = tpu.matmul %0, %19, %cst {dimension_numbers = #tpu.dot_dimension_numbers<[1], [0], [0], [1], [0, 0, 1, 1], [], []>} : vector<128x8xbf16>, vector<8x32xbf16>, vector<128x32xf32> -> vector<128x32xf32>
    %c0_6 = arith.constant 0 : index
    %c0_7 = arith.constant 0 : index
    %21 = vector.load %arg3[%c0_6, %c0_7] : memref<1x32xf32, #tpu.memory_space<vmem>>, vector<1x32xf32>
    %22 = vector.broadcast %21 : vector<1x32xf32> to vector<128x32xf32>
    %23 = arith.addf %20, %22 : vector<128x32xf32>
    %c63_i32 = arith.constant 63 : i32
    %24 = vector.broadcast %c63_i32 : i32 to vector<128x1xi32>
    %25 = arith.cmpi slt, %17, %24 : vector<128x1xi32>
    %c0_i32_8 = arith.constant 0 : i32
    %26 = arith.sitofp %c0_i32_8 : i32 to bf16
    %27 = vector.shape_cast %25 : vector<128x1xi1> to vector<128x1xi1>
    %28 = vector.broadcast %27 : vector<128x1xi1> to vector<128x8xi1>
    %29 = vector.broadcast %26 : bf16 to vector<128x8xbf16>
    %30 = arith.select %28, %0, %29 : vector<128x8xi1>, vector<128x8xbf16>
    %c1_i32_9 = arith.constant 1 : i32
    %31 = vector.broadcast %c1_i32_9 : i32 to vector<128x1xi32>
    %32 = arith.cmpi sge, %17, %31 : vector<128x1xi32>
    %c0_i32_10 = arith.constant 0 : i32
    %33 = arith.sitofp %c0_i32_10 : i32 to bf16
    %34 = vector.shape_cast %32 : vector<128x1xi1> to vector<128x1xi1>
    %35 = vector.broadcast %34 : vector<128x1xi1> to vector<128x8xi1>
    %36 = vector.broadcast %33 : bf16 to vector<128x8xbf16>
    %37 = arith.select %35, %0, %36 : vector<128x8xi1>, vector<128x8xbf16>
    %c0_11 = arith.constant 0 : index
    %c0_12 = arith.constant 0 : index
    %c0_13 = arith.constant 0 : index
    %38 = vector.load %arg2[%c0_11, %c0_12, %c0_13] : memref<3x8x32xbf16, #tpu.memory_space<vmem>>, vector<1x8x32xbf16>
    %39 = vector.shape_cast %38 : vector<1x8x32xbf16> to vector<8x32xbf16>
    %cst_14 = arith.constant dense<0.000000e+00> : vector<128x32xf32>
    %40 = tpu.matmul %30, %39, %cst_14 {dimension_numbers = #tpu.dot_dimension_numbers<[1], [0], [0], [1], [0, 0, 1, 1], [], []>} : vector<128x8xbf16>, vector<8x32xbf16>, vector<128x32xf32> -> vector<128x32xf32>
    %c2 = arith.constant 2 : index
    %c0_15 = arith.constant 0 : index
    %c0_16 = arith.constant 0 : index
    %41 = vector.load %arg2[%c2, %c0_15, %c0_16] : memref<3x8x32xbf16, #tpu.memory_space<vmem>>, vector<1x8x32xbf16>
    %42 = vector.shape_cast %41 : vector<1x8x32xbf16> to vector<8x32xbf16>
    %cst_17 = arith.constant dense<0.000000e+00> : vector<128x32xf32>
    %43 = tpu.matmul %37, %42, %cst_17 {dimension_numbers = #tpu.dot_dimension_numbers<[1], [0], [0], [1], [0, 0, 1, 1], [], []>} : vector<128x8xbf16>, vector<8x32xbf16>, vector<128x32xf32> -> vector<128x32xf32>
    %c1_i32_18 = arith.constant 1 : i32
    %44 = tpu.dynamic_rotate %40 by %c1_i32_18 dim 0 : vector<128x32xf32>, i32 -> vector<128x32xf32>
    %45 = arith.addf %23, %44 : vector<128x32xf32>
    %c127_i32 = arith.constant 127 : i32
    %46 = tpu.dynamic_rotate %43 by %c127_i32 dim 0 : vector<128x32xf32>, i32 -> vector<128x32xf32>
    %47 = arith.addf %45, %46 : vector<128x32xf32>
    %48 = math.tanh %47 : vector<128x32xf32>
    %49 = arith.truncf %48 : vector<128x32xf32> to vector<128x32xbf16>
    %c1_19 = arith.constant 1 : index
    %c0_20 = arith.constant 0 : index
    %c0_21 = arith.constant 0 : index
    %50 = vector.load %arg4[%c1_19, %c0_20, %c0_21] : memref<3x32x32xbf16, #tpu.memory_space<vmem>>, vector<1x32x32xbf16>
    %51 = vector.shape_cast %50 : vector<1x32x32xbf16> to vector<32x32xbf16>
    %cst_22 = arith.constant dense<0.000000e+00> : vector<128x32xf32>
    %52 = tpu.matmul %49, %51, %cst_22 {dimension_numbers = #tpu.dot_dimension_numbers<[1], [0], [0], [1], [0, 0, 1, 1], [], []>} : vector<128x32xbf16>, vector<32x32xbf16>, vector<128x32xf32> -> vector<128x32xf32>
    %c0_23 = arith.constant 0 : index
    %c0_24 = arith.constant 0 : index
    %53 = vector.load %arg5[%c0_23, %c0_24] : memref<1x32xf32, #tpu.memory_space<vmem>>, vector<1x32xf32>
    %54 = vector.broadcast %53 : vector<1x32xf32> to vector<128x32xf32>
    %55 = arith.addf %52, %54 : vector<128x32xf32>
    %c62_i32 = arith.constant 62 : i32
    %56 = vector.broadcast %c62_i32 : i32 to vector<128x1xi32>
    %57 = arith.cmpi slt, %17, %56 : vector<128x1xi32>
    %c0_i32_25 = arith.constant 0 : i32
    %58 = arith.sitofp %c0_i32_25 : i32 to bf16
    %59 = vector.shape_cast %57 : vector<128x1xi1> to vector<128x1xi1>
    %60 = vector.broadcast %59 : vector<128x1xi1> to vector<128x32xi1>
    %61 = vector.broadcast %58 : bf16 to vector<128x32xbf16>
    %62 = arith.select %60, %49, %61 : vector<128x32xi1>, vector<128x32xbf16>
    %c2_i32 = arith.constant 2 : i32
    %63 = vector.broadcast %c2_i32 : i32 to vector<128x1xi32>
    %64 = arith.cmpi sge, %17, %63 : vector<128x1xi32>
    %c0_i32_26 = arith.constant 0 : i32
    %65 = arith.sitofp %c0_i32_26 : i32 to bf16
    %66 = vector.shape_cast %64 : vector<128x1xi1> to vector<128x1xi1>
    %67 = vector.broadcast %66 : vector<128x1xi1> to vector<128x32xi1>
    %68 = vector.broadcast %65 : bf16 to vector<128x32xbf16>
    %69 = arith.select %67, %49, %68 : vector<128x32xi1>, vector<128x32xbf16>
    %c0_27 = arith.constant 0 : index
    %c0_28 = arith.constant 0 : index
    %c0_29 = arith.constant 0 : index
    %70 = vector.load %arg4[%c0_27, %c0_28, %c0_29] : memref<3x32x32xbf16, #tpu.memory_space<vmem>>, vector<1x32x32xbf16>
    %71 = vector.shape_cast %70 : vector<1x32x32xbf16> to vector<32x32xbf16>
    %cst_30 = arith.constant dense<0.000000e+00> : vector<128x32xf32>
    %72 = tpu.matmul %62, %71, %cst_30 {dimension_numbers = #tpu.dot_dimension_numbers<[1], [0], [0], [1], [0, 0, 1, 1], [], []>} : vector<128x32xbf16>, vector<32x32xbf16>, vector<128x32xf32> -> vector<128x32xf32>
    %c2_31 = arith.constant 2 : index
    %c0_32 = arith.constant 0 : index
    %c0_33 = arith.constant 0 : index
    %73 = vector.load %arg4[%c2_31, %c0_32, %c0_33] : memref<3x32x32xbf16, #tpu.memory_space<vmem>>, vector<1x32x32xbf16>
    %74 = vector.shape_cast %73 : vector<1x32x32xbf16> to vector<32x32xbf16>
    %cst_34 = arith.constant dense<0.000000e+00> : vector<128x32xf32>
    %75 = tpu.matmul %69, %74, %cst_34 {dimension_numbers = #tpu.dot_dimension_numbers<[1], [0], [0], [1], [0, 0, 1, 1], [], []>} : vector<128x32xbf16>, vector<32x32xbf16>, vector<128x32xf32> -> vector<128x32xf32>
    %c2_i32_35 = arith.constant 2 : i32
    %76 = tpu.dynamic_rotate %72 by %c2_i32_35 dim 0 : vector<128x32xf32>, i32 -> vector<128x32xf32>
    %77 = arith.addf %55, %76 : vector<128x32xf32>
    %c126_i32 = arith.constant 126 : i32
    %78 = tpu.dynamic_rotate %75 by %c126_i32 dim 0 : vector<128x32xf32>, i32 -> vector<128x32xf32>
    %79 = arith.addf %77, %78 : vector<128x32xf32>
    %80 = math.tanh %79 : vector<128x32xf32>
    %81 = arith.truncf %80 : vector<128x32xf32> to vector<128x32xbf16>
    %c1_36 = arith.constant 1 : index
    %c0_37 = arith.constant 0 : index
    %c0_38 = arith.constant 0 : index
    %82 = vector.load %arg6[%c1_36, %c0_37, %c0_38] : memref<3x32x32xbf16, #tpu.memory_space<vmem>>, vector<1x32x32xbf16>
    %83 = vector.shape_cast %82 : vector<1x32x32xbf16> to vector<32x32xbf16>
    %cst_39 = arith.constant dense<0.000000e+00> : vector<128x32xf32>
    %84 = tpu.matmul %81, %83, %cst_39 {dimension_numbers = #tpu.dot_dimension_numbers<[1], [0], [0], [1], [0, 0, 1, 1], [], []>} : vector<128x32xbf16>, vector<32x32xbf16>, vector<128x32xf32> -> vector<128x32xf32>
    %c0_40 = arith.constant 0 : index
    %c0_41 = arith.constant 0 : index
    %85 = vector.load %arg7[%c0_40, %c0_41] : memref<1x32xf32, #tpu.memory_space<vmem>>, vector<1x32xf32>
    %86 = vector.broadcast %85 : vector<1x32xf32> to vector<128x32xf32>
    %87 = arith.addf %84, %86 : vector<128x32xf32>
    %c60_i32 = arith.constant 60 : i32
    %88 = vector.broadcast %c60_i32 : i32 to vector<128x1xi32>
    %89 = arith.cmpi slt, %17, %88 : vector<128x1xi32>
    %c0_i32_42 = arith.constant 0 : i32
    %90 = arith.sitofp %c0_i32_42 : i32 to bf16
    %91 = vector.shape_cast %89 : vector<128x1xi1> to vector<128x1xi1>
    %92 = vector.broadcast %91 : vector<128x1xi1> to vector<128x32xi1>
    %93 = vector.broadcast %90 : bf16 to vector<128x32xbf16>
    %94 = arith.select %92, %81, %93 : vector<128x32xi1>, vector<128x32xbf16>
    %c4_i32 = arith.constant 4 : i32
    %95 = vector.broadcast %c4_i32 : i32 to vector<128x1xi32>
    %96 = arith.cmpi sge, %17, %95 : vector<128x1xi32>
    %c0_i32_43 = arith.constant 0 : i32
    %97 = arith.sitofp %c0_i32_43 : i32 to bf16
    %98 = vector.shape_cast %96 : vector<128x1xi1> to vector<128x1xi1>
    %99 = vector.broadcast %98 : vector<128x1xi1> to vector<128x32xi1>
    %100 = vector.broadcast %97 : bf16 to vector<128x32xbf16>
    %101 = arith.select %99, %81, %100 : vector<128x32xi1>, vector<128x32xbf16>
    %c0_44 = arith.constant 0 : index
    %c0_45 = arith.constant 0 : index
    %c0_46 = arith.constant 0 : index
    %102 = vector.load %arg6[%c0_44, %c0_45, %c0_46] : memref<3x32x32xbf16, #tpu.memory_space<vmem>>, vector<1x32x32xbf16>
    %103 = vector.shape_cast %102 : vector<1x32x32xbf16> to vector<32x32xbf16>
    %cst_47 = arith.constant dense<0.000000e+00> : vector<128x32xf32>
    %104 = tpu.matmul %94, %103, %cst_47 {dimension_numbers = #tpu.dot_dimension_numbers<[1], [0], [0], [1], [0, 0, 1, 1], [], []>} : vector<128x32xbf16>, vector<32x32xbf16>, vector<128x32xf32> -> vector<128x32xf32>
    %c2_48 = arith.constant 2 : index
    %c0_49 = arith.constant 0 : index
    %c0_50 = arith.constant 0 : index
    %105 = vector.load %arg6[%c2_48, %c0_49, %c0_50] : memref<3x32x32xbf16, #tpu.memory_space<vmem>>, vector<1x32x32xbf16>
    %106 = vector.shape_cast %105 : vector<1x32x32xbf16> to vector<32x32xbf16>
    %cst_51 = arith.constant dense<0.000000e+00> : vector<128x32xf32>
    %107 = tpu.matmul %101, %106, %cst_51 {dimension_numbers = #tpu.dot_dimension_numbers<[1], [0], [0], [1], [0, 0, 1, 1], [], []>} : vector<128x32xbf16>, vector<32x32xbf16>, vector<128x32xf32> -> vector<128x32xf32>
    %c4_i32_52 = arith.constant 4 : i32
    %108 = tpu.dynamic_rotate %104 by %c4_i32_52 dim 0 : vector<128x32xf32>, i32 -> vector<128x32xf32>
    %109 = arith.addf %87, %108 : vector<128x32xf32>
    %c124_i32 = arith.constant 124 : i32
    %110 = tpu.dynamic_rotate %107 by %c124_i32 dim 0 : vector<128x32xf32>, i32 -> vector<128x32xf32>
    %111 = arith.addf %109, %110 : vector<128x32xf32>
    %112 = math.tanh %111 : vector<128x32xf32>
    %113 = arith.truncf %112 : vector<128x32xf32> to vector<128x32xbf16>
    %c1_53 = arith.constant 1 : index
    %c0_54 = arith.constant 0 : index
    %c0_55 = arith.constant 0 : index
    %114 = vector.load %arg8[%c1_53, %c0_54, %c0_55] : memref<3x32x32xbf16, #tpu.memory_space<vmem>>, vector<1x32x32xbf16>
    %115 = vector.shape_cast %114 : vector<1x32x32xbf16> to vector<32x32xbf16>
    %cst_56 = arith.constant dense<0.000000e+00> : vector<128x32xf32>
    %116 = tpu.matmul %113, %115, %cst_56 {dimension_numbers = #tpu.dot_dimension_numbers<[1], [0], [0], [1], [0, 0, 1, 1], [], []>} : vector<128x32xbf16>, vector<32x32xbf16>, vector<128x32xf32> -> vector<128x32xf32>
    %c0_57 = arith.constant 0 : index
    %c0_58 = arith.constant 0 : index
    %117 = vector.load %arg9[%c0_57, %c0_58] : memref<1x32xf32, #tpu.memory_space<vmem>>, vector<1x32xf32>
    %118 = vector.broadcast %117 : vector<1x32xf32> to vector<128x32xf32>
    %119 = arith.addf %116, %118 : vector<128x32xf32>
    %c56_i32 = arith.constant 56 : i32
    %120 = vector.broadcast %c56_i32 : i32 to vector<128x1xi32>
    %121 = arith.cmpi slt, %17, %120 : vector<128x1xi32>
    %c0_i32_59 = arith.constant 0 : i32
    %122 = arith.sitofp %c0_i32_59 : i32 to bf16
    %123 = vector.shape_cast %121 : vector<128x1xi1> to vector<128x1xi1>
    %124 = vector.broadcast %123 : vector<128x1xi1> to vector<128x32xi1>
    %125 = vector.broadcast %122 : bf16 to vector<128x32xbf16>
    %126 = arith.select %124, %113, %125 : vector<128x32xi1>, vector<128x32xbf16>
    %c8_i32 = arith.constant 8 : i32
    %127 = vector.broadcast %c8_i32 : i32 to vector<128x1xi32>
    %128 = arith.cmpi sge, %17, %127 : vector<128x1xi32>
    %c0_i32_60 = arith.constant 0 : i32
    %129 = arith.sitofp %c0_i32_60 : i32 to bf16
    %130 = vector.shape_cast %128 : vector<128x1xi1> to vector<128x1xi1>
    %131 = vector.broadcast %130 : vector<128x1xi1> to vector<128x32xi1>
    %132 = vector.broadcast %129 : bf16 to vector<128x32xbf16>
    %133 = arith.select %131, %113, %132 : vector<128x32xi1>, vector<128x32xbf16>
    %c0_61 = arith.constant 0 : index
    %c0_62 = arith.constant 0 : index
    %c0_63 = arith.constant 0 : index
    %134 = vector.load %arg8[%c0_61, %c0_62, %c0_63] : memref<3x32x32xbf16, #tpu.memory_space<vmem>>, vector<1x32x32xbf16>
    %135 = vector.shape_cast %134 : vector<1x32x32xbf16> to vector<32x32xbf16>
    %cst_64 = arith.constant dense<0.000000e+00> : vector<128x32xf32>
    %136 = tpu.matmul %126, %135, %cst_64 {dimension_numbers = #tpu.dot_dimension_numbers<[1], [0], [0], [1], [0, 0, 1, 1], [], []>} : vector<128x32xbf16>, vector<32x32xbf16>, vector<128x32xf32> -> vector<128x32xf32>
    %c2_65 = arith.constant 2 : index
    %c0_66 = arith.constant 0 : index
    %c0_67 = arith.constant 0 : index
    %137 = vector.load %arg8[%c2_65, %c0_66, %c0_67] : memref<3x32x32xbf16, #tpu.memory_space<vmem>>, vector<1x32x32xbf16>
    %138 = vector.shape_cast %137 : vector<1x32x32xbf16> to vector<32x32xbf16>
    %cst_68 = arith.constant dense<0.000000e+00> : vector<128x32xf32>
    %139 = tpu.matmul %133, %138, %cst_68 {dimension_numbers = #tpu.dot_dimension_numbers<[1], [0], [0], [1], [0, 0, 1, 1], [], []>} : vector<128x32xbf16>, vector<32x32xbf16>, vector<128x32xf32> -> vector<128x32xf32>
    %c8_i32_69 = arith.constant 8 : i32
    %140 = tpu.dynamic_rotate %136 by %c8_i32_69 dim 0 : vector<128x32xf32>, i32 -> vector<128x32xf32>
    %141 = arith.addf %119, %140 : vector<128x32xf32>
    %c120_i32 = arith.constant 120 : i32
    %142 = tpu.dynamic_rotate %139 by %c120_i32 dim 0 : vector<128x32xf32>, i32 -> vector<128x32xf32>
    %143 = arith.addf %141, %142 : vector<128x32xf32>
    %144 = math.tanh %143 : vector<128x32xf32>
    %145 = arith.truncf %144 : vector<128x32xf32> to vector<128x32xbf16>
    %146 = arith.extf %145 : vector<128x32xbf16> to vector<128x32xf32>
    %147 = vector.shape_cast %146 : vector<128x32xf32> to vector<2x64x32xf32>
    %cst_70 = arith.constant dense<0.000000e+00> : vector<2x32xf32>
    %148 = vector.multi_reduction <add>, %147, %cst_70 [1] : vector<2x64x32xf32> to vector<2x32xf32>
    %c47_i32 = arith.constant 47 : i32
    %149 = vector.broadcast %c47_i32 : i32 to vector<128x1xi32>
    %150 = arith.cmpi sle, %17, %149 : vector<128x1xi32>
    %cst_71 = arith.constant 0.000000e+00 : f32
    %151 = vector.shape_cast %150 : vector<128x1xi1> to vector<128x1xi1>
    %152 = vector.broadcast %151 : vector<128x1xi1> to vector<128x32xi1>
    %153 = vector.broadcast %cst_71 : f32 to vector<128x32xf32>
    %154 = arith.select %152, %146, %153 : vector<128x32xi1>, vector<128x32xf32>
    %155 = vector.shape_cast %154 : vector<128x32xf32> to vector<2x64x32xf32>
    %cst_72 = arith.constant dense<0.000000e+00> : vector<2x32xf32>
    %156 = vector.multi_reduction <add>, %155, %cst_72 [1] : vector<2x64x32xf32> to vector<2x32xf32>
    %c16_i32 = arith.constant 16 : i32
    %157 = vector.broadcast %c16_i32 : i32 to vector<128x1xi32>
    %158 = arith.cmpi sge, %17, %157 : vector<128x1xi32>
    %cst_73 = arith.constant 0.000000e+00 : f32
    %159 = vector.shape_cast %158 : vector<128x1xi1> to vector<128x1xi1>
    %160 = vector.broadcast %159 : vector<128x1xi1> to vector<128x32xi1>
    %161 = vector.broadcast %cst_73 : f32 to vector<128x32xf32>
    %162 = arith.select %160, %146, %161 : vector<128x32xi1>, vector<128x32xf32>
    %163 = vector.shape_cast %162 : vector<128x32xf32> to vector<2x64x32xf32>
    %cst_74 = arith.constant dense<0.000000e+00> : vector<2x32xf32>
    %164 = vector.multi_reduction <add>, %163, %cst_74 [1] : vector<2x64x32xf32> to vector<2x32xf32>
    %c0_75 = arith.constant 0 : index
    %c0_76 = arith.constant 0 : index
    %c0_77 = arith.constant 0 : index
    %165 = vector.load %arg10[%c0_75, %c0_76, %c0_77] : memref<3x32x16xbf16, #tpu.memory_space<vmem>>, vector<1x32x16xbf16>
    %166 = vector.shape_cast %165 : vector<1x32x16xbf16> to vector<32x16xbf16>
    %167 = arith.extf %166 : vector<32x16xbf16> to vector<32x16xf32>
    %cst_78 = arith.constant dense<0.000000e+00> : vector<2x16xf32>
    %168 = tpu.matmul %156, %167, %cst_78 {dimension_numbers = #tpu.dot_dimension_numbers<[1], [0], [0], [1], [0, 0, 1, 1], [], []>} : vector<2x32xf32>, vector<32x16xf32>, vector<2x16xf32> -> vector<2x16xf32>
    %c1_79 = arith.constant 1 : index
    %c0_80 = arith.constant 0 : index
    %c0_81 = arith.constant 0 : index
    %169 = vector.load %arg10[%c1_79, %c0_80, %c0_81] : memref<3x32x16xbf16, #tpu.memory_space<vmem>>, vector<1x32x16xbf16>
    %170 = vector.shape_cast %169 : vector<1x32x16xbf16> to vector<32x16xbf16>
    %171 = arith.extf %170 : vector<32x16xbf16> to vector<32x16xf32>
    %cst_82 = arith.constant dense<0.000000e+00> : vector<2x16xf32>
    %172 = tpu.matmul %148, %171, %cst_82 {dimension_numbers = #tpu.dot_dimension_numbers<[1], [0], [0], [1], [0, 0, 1, 1], [], []>} : vector<2x32xf32>, vector<32x16xf32>, vector<2x16xf32> -> vector<2x16xf32>
    %173 = arith.addf %168, %172 : vector<2x16xf32>
    %c2_83 = arith.constant 2 : index
    %c0_84 = arith.constant 0 : index
    %c0_85 = arith.constant 0 : index
    %174 = vector.load %arg10[%c2_83, %c0_84, %c0_85] : memref<3x32x16xbf16, #tpu.memory_space<vmem>>, vector<1x32x16xbf16>
    %175 = vector.shape_cast %174 : vector<1x32x16xbf16> to vector<32x16xbf16>
    %176 = arith.extf %175 : vector<32x16xbf16> to vector<32x16xf32>
    %cst_86 = arith.constant dense<0.000000e+00> : vector<2x16xf32>
    %177 = tpu.matmul %164, %176, %cst_86 {dimension_numbers = #tpu.dot_dimension_numbers<[1], [0], [0], [1], [0, 0, 1, 1], [], []>} : vector<2x32xf32>, vector<32x16xf32>, vector<2x16xf32> -> vector<2x16xf32>
    %178 = arith.addf %173, %177 : vector<2x16xf32>
    %cst_87 = arith.constant 1.562500e-02 : f32
    %179 = vector.broadcast %cst_87 : f32 to vector<2x16xf32>
    %180 = arith.mulf %178, %179 : vector<2x16xf32>
    %c0_88 = arith.constant 0 : index
    %c0_89 = arith.constant 0 : index
    %181 = vector.load %arg11[%c0_88, %c0_89] : memref<1x16xf32, #tpu.memory_space<vmem>>, vector<1x16xf32>
    %182 = vector.broadcast %181 : vector<1x16xf32> to vector<2x16xf32>
    %183 = arith.addf %180, %182 : vector<2x16xf32>
    %c0_90 = arith.constant 0 : index
    %c0_91 = arith.constant 0 : index
    %184 = vector.load %arg12[%c0_90, %c0_91] : memref<2x16xf32, #tpu.memory_space<vmem>>, vector<2x16xf32>
    tpu.vector_store %arg12[%c0_90, %c0_91], %183 {strides = array<i32>} : memref<2x16xf32, #tpu.memory_space<vmem>>, vector<2x16xf32>,
    return
  }
  func.func @transform_0(%arg0: i32) -> (i32, i32) {
    %c0_i32 = arith.constant 0 : i32
    %c0_i32_0 = arith.constant 0 : i32
    return %arg0, %c0_i32 : i32, i32
  }
  func.func @transform_1(%arg0: i32) -> (i32, i32, i32) {
    %c0_i32 = arith.constant 0 : i32
    %c0_i32_0 = arith.constant 0 : i32
    %c0_i32_1 = arith.constant 0 : i32
    %c0_i32_2 = arith.constant 0 : i32
    return %c0_i32, %c0_i32_0, %c0_i32_1 : i32, i32, i32
  }
  func.func @transform_2(%arg0: i32) -> (i32, i32) {
    %c0_i32 = arith.constant 0 : i32
    %c0_i32_0 = arith.constant 0 : i32
    %c0_i32_1 = arith.constant 0 : i32
    return %c0_i32, %c0_i32_0 : i32, i32
  }
  func.func @transform_3(%arg0: i32) -> (i32, i32, i32) {
    %c0_i32 = arith.constant 0 : i32
    %c0_i32_0 = arith.constant 0 : i32
    %c0_i32_1 = arith.constant 0 : i32
    %c0_i32_2 = arith.constant 0 : i32
    return %c0_i32, %c0_i32_0, %c0_i32_1 : i32, i32, i32
  }
  func.func @transform_4(%arg0: i32) -> (i32, i32) {
    %c0_i32 = arith.constant 0 : i32
    %c0_i32_0 = arith.constant 0 : i32
    %c0_i32_1 = arith.constant 0 : i32
    return %c0_i32, %c0_i32_0 : i32, i32
  }
  func.func @transform_5(%arg0: i32) -> (i32, i32, i32) {
    %c0_i32 = arith.constant 0 : i32
    %c0_i32_0 = arith.constant 0 : i32
    %c0_i32_1 = arith.constant 0 : i32
    %c0_i32_2 = arith.constant 0 : i32
    return %c0_i32, %c0_i32_0, %c0_i32_1 : i32, i32, i32
  }
  func.func @transform_6(%arg0: i32) -> (i32, i32) {
    %c0_i32 = arith.constant 0 : i32
    %c0_i32_0 = arith.constant 0 : i32
    %c0_i32_1 = arith.constant 0 : i32
    return %c0_i32, %c0_i32_0 : i32, i32
  }
  func.func @transform_7(%arg0: i32) -> (i32, i32, i32) {
    %c0_i32 = arith.constant 0 : i32
    %c0_i32_0 = arith.constant 0 : i32
    %c0_i32_1 = arith.constant 0 : i32
    %c0_i32_2 = arith.constant 0 : i32
    return %c0_i32, %c0_i32_0, %c0_i32_1 : i32, i32, i32
  }
  func.func @transform_8(%arg0: i32) -> (i32, i32) {
    %c0_i32 = arith.constant 0 : i32
    %c0_i32_0 = arith.constant 0 : i32
    %c0_i32_1 = arith.constant 0 : i32
    return %c0_i32, %c0_i32_0 : i32, i32
  }
  func.func @transform_9(%arg0: i32) -> (i32, i32, i32) {
    %c0_i32 = arith.constant 0 : i32
    %c0_i32_0 = arith.constant 0 : i32
    %c0_i32_1 = arith.constant 0 : i32
    %c0_i32_2 = arith.constant 0 : i32
    return %c0_i32, %c0_i32_0, %c0_i32_1 : i32, i32, i32
  }
  func.func @transform_10(%arg0: i32) -> (i32, i32) {
    %c0_i32 = arith.constant 0 : i32
    %c0_i32_0 = arith.constant 0 : i32
    %c0_i32_1 = arith.constant 0 : i32
    return %c0_i32, %c0_i32_0 : i32, i32
  }
  func.func @transform_11(%arg0: i32) -> (i32, i32) {
    %c0_i32 = arith.constant 0 : i32
    %c0_i32_0 = arith.constant 0 : i32
    return %arg0, %c0_i32 : i32, i32
  }
}

</mosaic_0001>

<bundles_post_ra>
// kernel: tpu_custom_call.1
= control target key start
LH: loop header
LB: loop body
LE: loop exit
PB: predicated region body
PF: predicated region fallthrough
CT: control target
= control target key end

     0   :  { %16 = vsyncpa [#allocation3], 0  ;;  %s5861_s0 = inlined_call_operand.vmem [shape: bf16[128,8], index: 0, kind: input, shape index: {}]   ;;  %s5862_s1 = inlined_call_operand.hbm [shape: bf16[3,8,32], index: 1, kind: input, shape index: {}]   ;;  %s5863_s2 = inlined_call_operand.vmem [shape: f32[1,32], index: 2, kind: input, shape index: {}]   ;;  %s5864_s3 = inlined_call_operand.vmem [shape: bf16[3,32,32], index: 3, kind: input, shape index: {}]   ;;  %s5865_s4 = inlined_call_operand.vmem [shape: f32[1,32], index: 4, kind: input, shape index: {}]   ;;  %s5866_s5 = inlined_call_operand.vmem [shape: bf16[3,32,32], index: 5, kind: input, shape index: {}]   ;;  %s5867_s6 = inlined_call_operand.vmem [shape: f32[1,32], index: 6, kind: input, shape index: {}]   ;;  %s5868_s7 = inlined_call_operand.vmem [shape: bf16[3,32,32], index: 7, kind: input, shape index: {}]   ;;  %s5869_s8 = inlined_call_operand.vmem [shape: f32[1,32], index: 8, kind: input, shape index: {}]   ;;  %s5870_s9 = inlined_call_operand.vmem [shape: bf16[3,32,16], index: 9, kind: input, shape index: {}]   ;;  %s5871_s10 = inlined_call_operand.vmem [shape: f32[1,16], index: 10, kind: input, shape index: {}]   ;;  %s5872_s11 = inlined_call_operand.hbm [shape: f32[2,16], index: 11, kind: output, shape index: {}]  }
   0x1   :  { %17 = vsyncpa [#allocation4], 0  ;;  %s4761_s17 = smov [#allocation2]  }
   0x2   :  { %s25_s18 = sshll.u32 %s4761_s17, 4  ;;  %s26_s18 = int_to_ptr.vmem [resolvable:$true] %s25_s18 }
   0x3   :  { %s4725_s19 = scalar_lea.vmem %s26_s18, 192  ;;  %p4730_p1 = scmp.lt.s32.totalorder %s26_s18, %s26_s18 }
   0x4   :  { %p4726_p0 = scmp.ne.s32.totalorder %s26_s18, %s4725_s19  ;;  %p4731_p2 = scmp.lt.s32.totalorder %s4725_s19, %s4725_s19 }
   0x6   :  { %p4732_p3 = por %p4731_p2, %p4730_p1 }
   0x8   :  { %p4733_p4 = pnand %p4732_p3, %p4726_p0 }
   0xa   :  { %4736 = shalt.err (!%p4733_p4)
}
   0xb   :  { %s4762_s20 = smov 64   ;;  %s4763_s21 = smov 4  }
   0xc   :  { %31 = dma.hbm_to_vmem [thread:$0]  %s5862_s1, 192, %s26_s18, [#allocation3], %s4762_s20, %s4762_s20, %s4763_s21  }
   0xd   :  { %4757 = dma.done.wait [#allocation3], 192  }
   0xe   :  { %4758 = vsyncadd [#allocation3], 4294967104  ;;  %v72_v0 = vlaneseq  ;;  %vm355_vm0 = vcmask 1043456   ;;  %vm4764_vm1 = vmmov 1   ;;  %vm330_vm3 = vcmask 64512   ;;  %s4768_s19 = smov [#allocation5]  }
   0xf   :  { %vm4835_vm2 = vmpackc.low %vm4764_vm1, %vm4764_vm1  ;;  %v282_v6 = vld [vmem:[#allocation2 + $0x4] sm:$0xf]  ;;  %v616_v7 = vld [vmem:[#allocation2] sm:$0xf]  ;;  %s3889_s20 = sshll.u32 %s4768_s19, 4  ;;  %s3890_s20 = int_to_ptr.vmem [resolvable:$true] %s3889_s20 }
  0x10   :  { %v4832_v1 = vshrl.u32 %v72_v0, 7  ;;  %v4845_v8 = vld [vmem:[%s5861_s0] sm:$0xf]  ;;  %4552 = vmatprep.subr.msk.bf16.mxu0 %vm355_vm0, %v282_v6  ;;  %4553 = vmatprep.subr.msk.bf16.mxu1 %vm355_vm0, %v616_v7  ;;  %v357_v9 = vsel %vm355_vm0, %v282_v6, 0  ;;  %v682_v10 = vsel %vm355_vm0, %v616_v7, 0  ;;  %s4737_s21 = scalar_lea.vmem %s3890_s20, 32  ;;  %p4742_p6 = scmp.lt.s32.totalorder %s3890_s20, %s3890_s20 }
  0x11   :  { %v57_v11 = vld [vmem:[%s5861_s0 + $0x4] sm:$0xf]  ;;  %v520_v13 = vsel %vm4835_vm2, %v4845_v8, 0  ;;  %4286 = vmatpush3.bf16.msra.mxu0 %v357_v9  ;;  %4304 = vmatpush3.bf16.msra.mxu1 %v682_v10  ;;  %v58_v16 = vld [vmem:[%s5861_s0 + $0x8] sm:$0xf]  ;;  %p4738_p5 = scmp.ne.s32.totalorder %s3890_s20, %s4737_s21  ;;  %p4743_p7 = scmp.lt.s32.totalorder %s4737_s21, %s4737_s21 }
  0x12   :  { %v80_v2 = vadd.s32 56, %v4832_v1  ;;  %v88_v5 = vadd.s32 120, %v4832_v1  ;;  %v4855_v12 = vand.u32 63, %v4832_v1  ;;  %v3899_v14 = vcombine.low %v4845_v8, %v57_v11  ;;  %v59_v17 = vld [vmem:[%s5861_s0 + $0xc] sm:$0xf] }
  0x13   :  { %v4863_v15 = vsel %vm4835_vm2, %v57_v11, 0  ;;  %v3900_v19 = vcombine.low %v58_v16, %v59_v17  ;;  %v522_v20 = vsel %vm4835_vm2, %v58_v16, 0  ;;  %v782_v21 = vld [vmem:[#allocation2 + $0x8] sm:$0xf]  ;;  %v60_v22 = vld [vmem:[%s5861_s0 + $0x10] sm:$0xf]  ;;  %p4744_p8 = por %p4743_p7, %p4742_p6 }
  0x14   :  { %v4839_v4 = vand.u32 63, %v80_v2  ;;  %v3915_v18 = vcombine.low %v520_v13, %v4863_v15  ;;  %v4878_v23 = vand.u32 63, %v88_v5  ;;  %4287 = vmatprep.mubr.msk.bf16.mxu0 %vm330_vm3, %v3899_v14  ;;  %v523_v24 = vsel %vm4835_vm2, %v59_v17, 0  ;;  %4554 = vmatprep.subr.msk.bf16.mxu0 %vm355_vm0, %v782_v21  ;;  %v61_v26 = vld [vmem:[%s5861_s0 + $0x14] sm:$0xf]  ;;  %v4572_v16 = vld [vmem:[%s5864_s3 + $0x8] sm:$0xff]  }
  0x15   :  { %v848_v25 = vsel %vm355_vm0, %v782_v21, 0  ;;  %v524_v27 = vsel %vm4835_vm2, %v60_v22, 0  ;;  %4288 = vmatmul.mubr.msk.bf16.vlgmr.msra.gmra.mxu0 %vm330_vm3, %v3900_v19  ;;  %v3916_v28 = vcombine.low %v522_v20, %v523_v24  ;;  %v3901_v29 = vcombine.low %v60_v22, %v61_v26  ;;  %v62_v31 = vld [vmem:[%s5861_s0 + $0x18] sm:$0xf]  ;;  %v63_v32 = vld [vmem:[%s5861_s0 + $0x1c] sm:$0xf]  ;;  %p4745_p9 = pnand %p4744_p8, %p4738_p5 }
  0x16   :  { %vm463_vm4 = vcmp.lt.s32.totalorder %v4839_v4, 63  ;;  %4305 = vmatprep.mubr.msk.bf16.mxu1 %vm330_vm3, %v3915_v18  ;;  %v525_v30 = vsel %vm4835_vm2, %v61_v26, 0  ;;  %4322 = vmatpush3.bf16.msra.mxu0 %v848_v25  ;;  %v64_v35 = vld [vmem:[%s5861_s0 + $0x20] sm:$0xf]  ;;  %v65_v36 = vld [vmem:[%s5861_s0 + $0x24] sm:$0xf]  ;;  %v3902_v41 = vcombine.low %v62_v31, %v63_v32 }
  0x17   :  { %vm4903_vm5 = vmpackc.low %vm463_vm4, %vm463_vm4  ;;  %v3917_v34 = vcombine.low %v524_v27, %v525_v30  ;;  %vm536_vm6 = vcmp.ge.s32.totalorder %v4855_v12, 1  ;;  %4306 = vmatmul.mubr.msk.bf16.vlgmr.msra.gmra.mxu1 %vm330_vm3, %v3916_v28  ;;  %4291 = vmatprep.mubr.msk.bf16.mxu0 %vm330_vm3, %v3901_v29  ;;  %vm471_vm7 = vcmp.lt.s32.totalorder %v4878_v23, 63  ;;  %v526_v37 = vsel %vm4835_vm2, %v62_v31, 0  ;;  %v66_v42 = vld [vmem:[%s5861_s0 + $0x28] sm:$0xf]  ;;  %v4573_v17 = vld [vmem:[%s5864_s3 + $0x10] sm:$0xff]  }
  0x18   :  { %v527_v38 = vsel %vm4903_vm5, %v63_v32, 0  ;;  %v528_v39 = vsel %vm4835_vm2, %v64_v35, 0  ;;  %v529_v40 = vsel %vm4835_vm2, %v65_v36, 0  ;;  %v67_v43 = vld [vmem:[%s5861_s0 + $0x2c] sm:$0xf]  ;;  %v3903_v45 = vcombine.low %v64_v35, %v65_v36  ;;  %vm4941_vm8 = vmpackc.low %vm536_vm6, %vm536_vm6  ;;  %4359 = vmatprep.subr.bf16.mxu0 %v4572_v16  ;;  %v4574_v18 = vld [vmem:[%s5864_s3] sm:$0xff]  }
  0x19   :  { %4309 = vmatprep.mubr.msk.bf16.mxu1 %vm330_vm3, %v3917_v34  ;;  %v68_v44 = vld [vmem:[%s5861_s0 + $0x30] sm:$0xf]  ;;  %v69_v46 = vld [vmem:[%s5861_s0 + $0x34] sm:$0xf]  ;;  %v3918_v47 = vcombine.low %v526_v37, %v527_v38  ;;  %v3919_v49 = vcombine.low %v528_v39, %v529_v40  ;;  %v530_v50 = vsel %vm4835_vm2, %v66_v42, 0  ;;  %v531_v51 = vsel %vm4835_vm2, %v67_v43, 0  ;;  %vm4957_vm9 = vmpackc.low %vm471_vm7, %vm471_vm7 }
  0x1a   :  { %v532_v52 = vsel %vm4835_vm2, %v68_v44, 0  ;;  %v533_v53 = vsel %vm4835_vm2, %v69_v46, 0  ;;  %v3904_v55 = vcombine.low %v66_v42, %v67_v43  ;;  %v3905_v56 = vcombine.low %v68_v44, %v69_v46  ;;  %v70_v58 = vld [vmem:[%s5861_s0 + $0x38] sm:$0xf]  ;;  %v71_v59 = vld [vmem:[%s5861_s0 + $0x3c] sm:$0xf] }
  0x1b   :  { %v3920_v57 = vcombine.low %v530_v50, %v531_v51  ;;  %v3921_v60 = vcombine.low %v532_v52, %v533_v53  ;;  %v600_v61 = vsel %vm4941_vm8, %v4845_v8, 0  ;;  %v534_v62 = vsel %vm4835_vm2, %v70_v58, 0  ;;  %v5015_v19 = vld [vmem:[%s5864_s3 + $0x28] sm:$0xff]   ;;  %v5069_v54 = vld [vmem:[%s5863_s2] ss:$0 sm:$0xff] }
  0x1c   :  { %v535_v63 = vsel %vm4957_vm9, %v71_v59, 0  ;;  %v3906_v0 = vcombine.low %v70_v58, %v71_v59  ;;  %v81_v2 = vadd.s32 64, %v4832_v1  ;;  %v3931_v5 = vcombine.low %v600_v61, %v4863_v15  ;;  %v4571_v15 = vld [vmem:[%s5864_s3 + $0x18] sm:$0xff]  }
  0x1d   :  { %4292 = vmatmul.mubr.msk.bf16.gmra.mxu0 %vm330_vm3, %v3902_v41  ;;  %v3922_v6 = vcombine.low %v534_v62, %v535_v63  ;;  %v607_v8 = vsel %vm4835_vm2, %v63_v32, 0  ;;  %v615_v13 = vsel %vm4835_vm2, %v71_v59, 0  ;;  %4339 = vmatprep.subr.bf16.mxu1 %v4571_v15  ;;  %vm1222_vm12 = vcmp.lt.s32.totalorder %v4839_v4, 62 }
  0x1e   :  { %4295 = vmatprep.mubr.msk.bf16.mxu0 %vm330_vm3, %v3903_v45  ;;  %v4984_v7 = vand.u32 63, %v81_v2  ;;  %v3934_v10 = vcombine.low %v526_v37, %v607_v8  ;;  %v3938_v14 = vcombine.low %v534_v62, %v615_v13  ;;  %4340 = vmatpush3.bf16.msra.mxu1 %v4571_v15  ;;  %v4765_v52 = vmov 0   ;;  %vm1270_vm13 = vmpackc.low %vm1222_vm12, %vm1222_vm12 }
  0x1f   :  { %4310 = vmatmul.mubr.msk.bf16.gmra.mxu1 %vm330_vm3, %v3918_v47  ;;  %4341 = vmatprep.subr.bf16.mxu1 %v4573_v17  ;;  %v5064_v53 = vsel %vm4835_vm2, 65537, %v4765_v52  ;;  %vm963_vm14 = vcmp.lt.s32.totalorder %v4832_v1, 1  ;;  %vm1012_vm15 = vcmp.lt.s32.totalorder %v4832_v1, 7  ;;  %v5083_v2 = vsel %vm1270_vm13, 65537, %v4765_v52 }
  0x20   :  { %4313 = vmatprep.mubr.msk.bf16.mxu1 %vm330_vm3, %v3919_v49  ;;  %vm544_vm10 = vcmp.ge.s32.totalorder %v4984_v7, 1  ;;  %v3962_v3 = vcombine.low %v5064_v53, %v5064_v53  ;;  %vm1093_vm0 = vcmask 261120   ;;  %vm1230_vm4 = vcmp.lt.s32.totalorder %v4878_v23, 62 }
  0x21   :  { %vm592_vm11 = vmpackc.low %vm544_vm10, %vm544_vm10  ;;  %vm1343_vm9 = vcmp.ge.s32.totalorder %v4984_v7, 2  ;;  %vm2004_vm12 = vcmp.lt.s32.totalorder %v4839_v4, 60  ;;  %vm1746_vm13 = vcmp.lt.s32.totalorder %v4832_v1, 2 }
  0x22   :  { %v608_v9 = vsel %vm592_vm11, %v64_v35, 0  ;;  %4342 = vmatpush3.bf16.msra.mxu1 %v4573_v17  ;;  %vm5147_vm1 = vcmp.ne.s16.totalorder %v3962_v3, 0  ;;  %vm1278_vm6 = vmpackc.low %vm1230_vm4, %vm1230_vm4  ;;  %vm2012_vm4 = vcmp.lt.s32.totalorder %v4878_v23, 60 }
  0x23   :  { %v3935_v11 = vcombine.low %v608_v9, %v529_v40  ;;  %4379 = vmatprep.subr.bf16.mxu1 %v5015_v19  ;;  %vm1391_vm10 = vmpackc.low %vm1343_vm9, %vm1343_vm9  ;;  %vm2125_vm9 = vcmp.ge.s32.totalorder %v4984_v7, 4 }
  0x25   :  { %4296 = vmatmul.mubr.msk.bf16.gmra.mxu0 %vm330_vm3, %v3904_v55 }
  0x26   :  { %4299 = vmatprep.mubr.msk.bf16.mxu0 %vm330_vm3, %v3905_v56 }
  0x27   :  { %4314 = vmatmul.mubr.msk.bf16.gmra.mxu1 %vm330_vm3, %v3920_v57 }
  0x28   :  { %4317 = vmatprep.mubr.msk.bf16.mxu1 %vm330_vm3, %v3921_v60 }
  0x2d   :  { %4300 = vmatmul.mubr.msk.bf16.gmra.mxu0 %vm330_vm3, %v3906_v0 }
  0x2e   :  { %4323 = vmatprep.mubr.msk.bf16.mxu0 %vm330_vm3, %v3931_v5 }
  0x2f   :  { %4318 = vmatmul.mubr.msk.bf16.gmra.mxu1 %vm330_vm3, %v3922_v6 }
  0x35   :  { %4324 = vmatmul.mubr.msk.bf16.vlgmr.msra.gmra.mxu0 %vm330_vm3, %v3916_v28 }
  0x36   :  { %4327 = vmatprep.mubr.msk.bf16.mxu0 %vm330_vm3, %v3917_v34  ;;  %4360 = vmatpush3.bf16.msra.mxu0 %v4572_v16 }
  0x37   :  { %4361 = vmatprep.subr.bf16.mxu0 %v4574_v18 }
  0x3a   :  { %4362 = vmatpush3.bf16.msra.mxu0 %v4574_v18 }
  0x3d   :  { %4328 = vmatmul.mubr.msk.bf16.gmra.mxu0 %vm330_vm3, %v3934_v10 }
  0x3e   :  { %4331 = vmatprep.mubr.msk.bf16.mxu0 %vm330_vm3, %v3935_v11 }
  0x45   :  { %4332 = vmatmul.mubr.msk.bf16.gmra.mxu0 %vm330_vm3, %v3920_v57 }
  0x46   :  { %4335 = vmatprep.mubr.msk.bf16.mxu0 %vm330_vm3, %v3921_v60 }
  0x4d   :  { %4336 = vmatmul.mubr.msk.bf16.gmra.mxu0 %vm330_vm3, %v3938_v14  ;;  %vm1335_vm3 = vcmp.ge.s32.totalorder %v4855_v12, 2 }
  0x4e   :  { %vm1383_vm5 = vmpackc.low %vm1335_vm3, %vm1335_vm3  ;;  %vm2117_vm3 = vcmp.ge.s32.totalorder %v4855_v12, 4 }
  0xd5   :  { %v4289_v20 = vpop.f32.mrf.mxu0 }
  0xd6   :  { %v402_v62 = vadd.f32 %v4289_v20, %v5069_v54 }
  0xd7   :  { %v4307_v21 = vpop.f32.mrf.mxu1  ;;  %v393_v22 = vpop.f32.mrf.mxu0 }
  0xd8   :  { %v949_v55 = vrot.slane %v4307_v21, 7  ;;  %v394_v63 = vadd.f32 %v5069_v54, %v393_v22 }
  0xd9   :  { %v718_v24 = vpop.f32.mrf.mxu1  ;;  %v4290_v25 = vpop.f32.mrf.mxu0 }
  0xda   :  { %v947_v56 = vrot.slane %v718_v24, 7  ;;  %v405_v5 = vadd.f32 %v4290_v25, %v5069_v54 }
  0xdb   :  { %v5018_v26 = vpop.f32.mrf.mxu1  ;;  %v396_v27 = vpop.f32.mrf.mxu0 }
  0xdc   :  { %v950_v57 = vrot.slane %v5018_v26, 7  ;;  %v397_v0 = vadd.f32 %v5069_v54, %v396_v27 }
  0xdd   :  { %v721_v28 = vpop.f32.mrf.mxu1  ;;  %v4293_v29 = vpop.f32.mrf.mxu0 }
  0xde   :  { %v948_v58 = vrot.slane %v721_v28, 7  ;;  %v976_v6 = vsel %vm963_vm14, %v949_v55, %v950_v57  ;;  %v418_v17 = vadd.f32 %v4293_v29, %v5069_v54 }
  0xdf   :  { %v5020_v30 = vpop.f32.mrf.mxu1  ;;  %v409_v31 = vpop.f32.mrf.mxu0 }
  0xe0   :  { %v978_v8 = vsel %vm963_vm14, %v947_v56, %v948_v58  ;;  %v953_v11 = vrot.slane %v5020_v30, 7  ;;  %v977_v16 = vsel %vm963_vm14, %v948_v58, %v949_v55  ;;  %v410_v18 = vadd.f32 %v5069_v54, %v409_v31 }
  0xe1   :  { %v5022_v32 = vpop.f32.mrf.mxu1  ;;  %v4294_v33 = vpop.f32.mrf.mxu0  ;;  %v981_v22 = vadd.f32 %v978_v8, %v397_v0 }
  0xe2   :  { %v951_v9 = vrot.slane %v5022_v32, 7  ;;  %v421_v24 = vadd.f32 %v4294_v33, %v5069_v54 }
  0xe3   :  { %v5024_v34 = vpop.f32.mrf.mxu1  ;;  %v5026_v35 = vpop.f32.mrf.mxu0 }
  0xe4   :  { %v954_v13 = vrot.slane %v5024_v34, 7  ;;  %v975_v27 = vsel %vm963_vm14, %v950_v57, %v951_v9  ;;  %v982_v34 = vadd.f32 %v977_v16, %v402_v62 }
  0xe5   :  { %v5028_v36 = vpop.f32.mrf.mxu1  ;;  %v5030_v37 = vpop.f32.mrf.mxu0 }
  0xe6   :  { %v952_v28 = vrot.slane %v5028_v36, 7  ;;  %v972_v31 = vsel %vm963_vm14, %v953_v11, %v954_v13  ;;  %v413_v36 = vadd.f32 %v5069_v54, %v5026_v35  ;;  %v434_v16 = vadd.f32 %v5030_v37, %v5069_v54 }
  0xe7   :  { %v5032_v38 = vpop.f32.mrf.mxu1  ;;  %v5034_v39 = vpop.f32.mrf.mxu0 }
  0xe8   :  { %v974_v35 = vsel %vm963_vm14, %v951_v9, %v952_v28 }
  0xe9   :  { %v5036_v40 = vpop.f32.mrf.mxu1  ;;  %v5038_v41 = vpop.f32.mrf.mxu0 }
  0xea   :  { %v955_v62 = vrot.slane %v5036_v40, 7  ;;  %v957_v40 = vrot.slane %v5032_v38, 7 }
  0xeb   :  { %v5040_v42 = vpop.f32.mrf.mxu1  ;;  %v5042_v43 = vpop.f32.mrf.mxu0 }
  0xec   :  { %v971_v37 = vsel %vm963_vm14, %v954_v13, %v955_v62 }
  0xed   :  { %v5044_v44 = vpop.f32.mrf.mxu1  ;;  %v5046_v45 = vpop.f32.mrf.mxu0 }
  0xef   :  { %v5048_v46 = vpop.f32.mrf.mxu1  ;;  %v5050_v47 = vpop.f32.mrf.mxu0 }
  0xf0   :  { %v961_v3 = vrot.slane %v5048_v46, 7 }
  0xf1   :  { %v5052_v48 = vpop.f32.mrf.mxu1  ;;  %v5054_v49 = vpop.f32.mrf.mxu0 }
  0xf3   :  { %v5057_v50 = vpop.f32.mrf.mxu1  ;;  %v5059_v51 = vpop.f32.mrf.mxu0 }
  0xf4   :  { %v962_v60 = vrot.slane %v5057_v50, 7 }
  0xf5   :  { %v4325_v59 = vpop.f32.mrf.mxu0 }
  0xf6   :  { %v979_v14 = vsel %vm963_vm14, %v962_v60, %v947_v56  ;;  %v998_v20 = vrot.slane %v4325_v59, 1  ;;  %v983_v56 = vadd.f32 %v976_v6, %v405_v5 }
  0xf7   :  { %v5074_v61 = vpop.f32.mrf.mxu0  ;;  %v980_v30 = vadd.f32 %v979_v14, %v394_v63  ;;  %v984_v63 = vadd.f32 %v975_v27, %v410_v18  ;;  %v973_v14 = vsel %vm963_vm14, %v952_v28, %v953_v11  ;;  %v956_v27 = vrot.slane %v5044_v44, 7 }
  0xf8   :  { %v996_v25 = vrot.slane %v5074_v61, 1  ;;  %v986_v28 = vadd.f32 %v973_v14, %v418_v17 }
  0xf9   :  { %v4326_v10 = vpop.f32.mrf.mxu0 }
  0xfa   :  { %v999_v15 = vrot.slane %v4326_v10, 1  ;;  %v987_v10 = vadd.f32 %v972_v31, %v421_v24  ;;  %v958_v24 = vrot.slane %v5040_v42, 7  ;;  %v450_v31 = vadd.f32 %v5046_v45, %v5069_v54 }
  0xfb   :  { %v887_v21 = vpop.f32.mrf.mxu0 }
  0xfc   :  { %v997_v26 = vrot.slane %v887_v21, 1  ;;  %v1025_v32 = vsel %vm1012_vm15, %v998_v20, %v999_v15 }
  0xfd   :  { %v4329_v29 = vpop.f32.mrf.mxu0  ;;  %v1031_v0 = vadd.f32 %v1025_v32, %v982_v34  ;;  %v429_v32 = vadd.f32 %v5069_v54, %v5042_v43 }
  0xfe   :  { %v1026_v33 = vsel %vm1012_vm15, %v997_v26, %v998_v20  ;;  %v1027_v55 = vsel %vm1012_vm15, %v996_v25, %v997_v26  ;;  %v426_v20 = vadd.f32 %v5069_v54, %v5034_v39  ;;  %v1002_v21 = vrot.slane %v4329_v29, 1 }
  0xff   :  { %v1029_v57 = vadd.f32 %v1027_v55, %v980_v30  ;;  %v1030_v58 = vadd.f32 %v1026_v33, %v981_v22  ;;  %v900_v59 = vpop.f32.mrf.mxu0  ;;  %v985_v26 = vadd.f32 %v974_v35, %v413_v36  ;;  %v437_v39 = vadd.f32 %v5038_v41, %v5069_v54  ;;  %v769_v33 = vpop.f32.mrf.mxu1 }
 0x100   :  { %v1000_v8 = vrot.slane %v900_v59, 1  ;;  %v988_v13 = vadd.f32 %v971_v37, %v426_v20  ;;  %v968_v41 = vsel %vm963_vm14, %v957_v40, %v958_v24  ;;  %v970_v36 = vsel %vm963_vm14, %v955_v62, %v956_v27 }
 0x101   :  { %4589 = vtanh.f32 %v1029_v57  ;;  %v4330_v5 = vpop.f32.mrf.mxu0  ;;  %v989_v35 = vadd.f32 %v970_v36, %v429_v32  ;;  %v442_v62 = vadd.f32 %v5069_v54, %v5050_v47  ;;  %v964_v47 = vsel %vm963_vm14, %v961_v3, %v962_v60 }
 0x102   :  { %4591 = vtanh.f32 %v1030_v58  ;;  %v1024_v6 = vsel %vm1012_vm15, %v999_v15, %v1000_v8  ;;  %v1003_v18 = vrot.slane %v4330_v5, 1  ;;  %v959_v58 = vrot.slane %v5052_v48, 7 }
 0x103   :  { %v1032_v11 = vadd.f32 %v1024_v6, %v983_v56  ;;  %v903_v22 = vpop.f32.mrf.mxu0  ;;  %4593 = vtanh.f32 %v1031_v0  ;;  %v969_v56 = vsel %vm963_vm14, %v956_v27, %v957_v40  ;;  %v960_v0 = vrot.slane %v769_v33, 7  ;;  %v4576_v33 = vld [vmem:[%s5864_s3 + $0x20] sm:$0xff]  }
 0x104   :  { %v1001_v9 = vrot.slane %v903_v22, 1  ;;  %v1021_v38 = vsel %vm1012_vm15, %v1002_v21, %v1003_v18  ;;  %v990_v6 = vadd.f32 %v969_v56, %v434_v16  ;;  %v453_v48 = vadd.f32 %v5054_v49, %v5069_v54 }
 0x105   :  { %4595 = vtanh.f32 %v1032_v11  ;;  %v4333_v15 = vpop.f32.mrf.mxu0  ;;  %v1035_v55 = vadd.f32 %v1021_v38, %v986_v28  ;;  %v445_v11 = vadd.f32 %v5069_v54, %v5059_v51  ;;  %v965_v22 = vsel %vm963_vm14, %v960_v0, %v961_v3 }
 0x106   :  { %v1022_v30 = vsel %vm1012_vm15, %v1001_v9, %v1002_v21  ;;  %v1023_v42 = vsel %vm1012_vm15, %v1000_v8, %v1001_v9  ;;  %v1006_v8 = vrot.slane %v4333_v15, 1  ;;  %v966_v50 = vsel %vm963_vm14, %v959_v58, %v960_v0 }
 0x107   :  { %v1033_v44 = vadd.f32 %v1023_v42, %v984_v63  ;;  %v1034_v29 = vadd.f32 %v1022_v30, %v985_v26  ;;  %v916_v34 = vpop.f32.mrf.mxu0  ;;  %v991_v63 = vadd.f32 %v968_v41, %v437_v39  ;;  %v995_v28 = vadd.f32 %v964_v47, %v453_v48 }
 0x108   :  { %v1004_v43 = vrot.slane %v916_v34, 1  ;;  %v993_v32 = vadd.f32 %v966_v50, %v445_v11 }
 0x109   :  { %4597 = vtanh.f32 %v1033_v44  ;;  %v4334_v57 = vpop.f32.mrf.mxu0  ;;  %v994_v44 = vadd.f32 %v965_v22, %v450_v31 }
 0x10a   :  { %4599 = vtanh.f32 %v1034_v29  ;;  %v1020_v59 = vsel %vm1012_vm15, %v1003_v18, %v1004_v43  ;;  %v1007_v45 = vrot.slane %v4334_v57, 1 }
 0x10b   :  { %v1036_v14 = vadd.f32 %v1020_v59, %v987_v10  ;;  %v919_v5 = vpop.f32.mrf.mxu0  ;;  %4601 = vtanh.f32 %v1035_v55  ;;  %v967_v10 = vsel %vm963_vm14, %v958_v24, %v959_v58  ;;  %vm2052_vm14 = vmpackc.low %vm2004_vm12, %vm2004_vm12  ;;  %vm2528_vm12 = vcmp.lt.s32.totalorder %v4832_v1, 4 }
 0x10c   :  { %v1005_v46 = vrot.slane %v919_v5, 1  ;;  %v1017_v18 = vsel %vm1012_vm15, %v1006_v8, %v1007_v45  ;;  %v992_v15 = vadd.f32 %v967_v10, %v442_v62  ;;  %v1399_v10 = vsel %vm1383_vm5, 65537, %v4765_v52  ;;  %vm2165_vm5 = vmpackc.low %vm2117_vm3, %vm2117_vm3 }
 0x10d   :  { %4603 = vtanh.f32 %v1036_v14  ;;  %v4337_v40 = vpop.f32.mrf.mxu0  ;;  %v1039_v60 = vadd.f32 %v1017_v18, %v990_v6  ;;  %v3970_v22 = vcombine.low %v1399_v10, %v5064_v53  ;;  %v2181_v23 = vsel %vm2165_vm5, 65537, %v4765_v52 }
 0x10e   :  { %v4590_v20 = vpop.eup %4589  ;;  %v1018_v16 = vsel %vm1012_vm15, %v1005_v46, %v1006_v8  ;;  %v1019_v49 = vsel %vm1012_vm15, %v1004_v43, %v1005_v46  ;;  %v1010_v39 = vrot.slane %v4337_v40, 1  ;;  %vm3881_vm3 = vcmask 123904  }
 0x10f   :  { %v4592_v21 = vpop.eup %4591  ;;  %v1037_v37 = vadd.f32 %v1019_v49, %v988_v13  ;;  %v1038_v24 = vadd.f32 %v1018_v16, %v989_v35  ;;  %v932_v9 = vpop.f32.mrf.mxu0  ;;  %vm1439_vm8 = vcmp.ne.s16.totalorder %v3970_v22, 0 }
 0x110   :  { %v1008_v26 = vrot.slane %v932_v9, 1  ;;  %v5185_v27 = vpack.c.bf16 %v4592_v21, %v4590_v20  ;;  %v4594_v38 = vpop.eup %4593  ;;  %v1294_v20 = vsel %vm1278_vm6, 65537, %v4765_v52  ;;  %vm2060_vm6 = vmpackc.low %vm2012_vm4, %vm2012_vm4 }
 0x111   :  { %4605 = vtanh.f32 %v1037_v37  ;;  %v4338_v30 = vpop.f32.mrf.mxu0  ;;  %v3969_v11 = vcombine.low %v5064_v53, %v1294_v20 }
 0x112   :  { %v4596_v51 = vpop.eup %4595  ;;  %4607 = vtanh.f32 %v1038_v24  ;;  %v1016_v54 = vsel %vm1012_vm15, %v1007_v45, %v1008_v26  ;;  %v1011_v42 = vrot.slane %v4338_v30, 1  ;;  %4343 = vmatprep.mubr.msk.bf16.mxu1 %vm1093_vm0, %v5185_v27  ;;  %v1327_v13 = vsel %vm5147_vm1, %v5185_v27, 0  ;;  %v4577_v30 = vld [vmem:[%s5866_s5 + $0x18] sm:$0xff]  }
 0x113   :  { %v1040_v29 = vadd.f32 %v1016_v54, %v991_v63  ;;  %4363 = vmatprep.mubr.msk.bf16.mxu0 %vm1093_vm0, %v1327_v13  ;;  %v935_v34 = vpop.f32.mrf.mxu0  ;;  %v1062_v41 = vpack.c.bf16 %v4596_v51, %v4594_v38  ;;  %4609 = vtanh.f32 %v1039_v60  ;;  %vm1326_vm7 = vcmp.ne.s16.totalorder %v3969_v11, 0  ;;  %4399 = vmatprep.subr.bf16.mxu0 %v4577_v30  ;;  %v4578_v51 = vld [vmem:[%s5866_s5 + $0x8] sm:$0xff]   ;;  %v4579_v54 = vld [vmem:[%s5866_s5 + $0x10] sm:$0xff]  }
 0x114   :  { %v1013_v55 = vsel %vm1012_vm15, %v1010_v39, %v1011_v42  ;;  %v1028_v43 = vsel %vm1012_vm15, %v1011_v42, %v996_v25  ;;  %v1009_v56 = vrot.slane %v935_v34, 1  ;;  %v3965_v25 = vcombine.low %v5064_v53, %v5083_v2  ;;  %v4580_v42 = vld [vmem:[%s5866_s5] sm:$0xff]   ;;  %v5276_v13 = vld [vmem:[%s5866_s5 + $0x28] sm:$0xff]  }
 0x115   :  { %4611 = vtanh.f32 %v1040_v29  ;;  %v1043_v31 = vadd.f32 %v1013_v55, %v994_v44  ;;  %v1044_v36 = vadd.f32 %v1028_v43, %v995_v28  ;;  %4344 = vmatmul.mubr.msk.bf16.vlgmr.msra.gmra.mxu1 %vm1093_vm0, %v1062_v41  ;;  %v5207_v3 = vsel %vm5147_vm1, %v1062_v41, 0 }
 0x116   :  { %v4598_v57 = vpop.eup %4597  ;;  %v1014_v58 = vsel %vm1012_vm15, %v1009_v56, %v1010_v39  ;;  %v1015_v61 = vsel %vm1012_vm15, %v1008_v26, %v1009_v56  ;;  %4364 = vmatmul.mubr.msk.bf16.vlgmr.msra.gmra.mxu0 %vm1093_vm0, %v5207_v3  ;;  %4380 = vmatpush3.bf16.msra.mxu1 %v5015_v19  ;;  %vm1322_vm2 = vcmp.ne.s16.totalorder %v3965_v25, 0  ;;  %v1447_v26 = vsel %vm1439_vm8, %v5185_v27, 0 }
 0x117   :  { %v4600_v59 = vpop.eup %4599  ;;  %4613 = vtanh.f32 %v1043_v31  ;;  %v1041_v45 = vadd.f32 %v1015_v61, %v992_v15  ;;  %v1042_v63 = vadd.f32 %v1014_v58, %v993_v32  ;;  %4381 = vmatprep.subr.bf16.mxu1 %v4576_v33  ;;  %v1407_v38 = vsel %vm1391_vm10, 65537, %v4765_v52  ;;  %4400 = vmatpush3.bf16.msra.mxu0 %v4577_v30  ;;  %vm2173_vm10 = vmpackc.low %vm2125_vm9, %vm2125_vm9 }
 0x118   :  { %4615 = vtanh.f32 %v1044_v36  ;;  %v1063_v0 = vpack.c.bf16 %v4600_v59, %v4598_v57  ;;  %v4602_v8 = vpop.eup %4601  ;;  %v3974_v15 = vcombine.low %v1407_v38, %v5064_v53  ;;  %4401 = vmatprep.subr.bf16.mxu0 %v4579_v54  ;;  %vm1795_vm15 = vcmp.lt.s32.totalorder %v4832_v1, 6 }
 0x119   :  { %4617 = vtanh.f32 %v1041_v45 }
 0x11a   :  { %v4604_v14 = vpop.eup %4603  ;;  %4619 = vtanh.f32 %v1042_v63  ;;  %4347 = vmatprep.mubr.msk.bf16.mxu1 %vm1093_vm0, %v1063_v0  ;;  %v1329_v5 = vsel %vm5147_vm1, %v1063_v0, 0  ;;  %4382 = vmatpush3.bf16.msra.mxu1 %v4576_v33  ;;  %vm1443_vm11 = vcmp.ne.s16.totalorder %v3974_v15, 0 }
 0x11b   :  { %4367 = vmatprep.mubr.msk.bf16.mxu0 %vm1093_vm0, %v1329_v5  ;;  %v1064_v19 = vpack.c.bf16 %v4604_v14, %v4602_v8  ;;  %4419 = vmatprep.subr.bf16.mxu1 %v4578_v51 }
 0x11c   :  { %4402 = vmatpush3.bf16.msra.mxu0 %v4579_v54 }
 0x11d   :  { %4348 = vmatmul.mubr.msk.bf16.gmra.mxu1 %vm1093_vm0, %v1064_v19  ;;  %v1330_v2 = vsel %vm1322_vm2, %v1064_v19, 0  ;;  %v1450_v27 = vsel %vm5147_vm1, %v1064_v19, 0  ;;  %4439 = vmatprep.subr.bf16.mxu0 %v5276_v13 }
 0x11e   :  { %v4606_v35 = vpop.eup %4605  ;;  %4368 = vmatmul.mubr.msk.bf16.gmra.mxu0 %vm1093_vm0, %v1330_v2 }
 0x11f   :  { %v4608_v62 = vpop.eup %4607 }
 0x120   :  { %v1065_v46 = vpack.c.bf16 %v4608_v62, %v4606_v35  ;;  %v4610_v6 = vpop.eup %4609 }
 0x122   :  { %v4612_v48 = vpop.eup %4611  ;;  %4351 = vmatprep.mubr.msk.bf16.mxu1 %vm1093_vm0, %v1065_v46  ;;  %v1331_v18 = vsel %vm5147_vm1, %v1065_v46, 0  ;;  %v1451_v28 = vsel %vm1443_vm11, %v1065_v46, 0 }
 0x123   :  { %4371 = vmatprep.mubr.msk.bf16.mxu0 %vm1093_vm0, %v1331_v18  ;;  %v1066_v40 = vpack.c.bf16 %v4612_v48, %v4610_v6 }
 0x124   :  { %v4614_v47 = vpop.eup %4613 }
 0x125   :  { %v4616_v16 = vpop.eup %4615  ;;  %4352 = vmatmul.mubr.msk.bf16.gmra.mxu1 %vm1093_vm0, %v1066_v40  ;;  %v1332_v49 = vsel %vm5147_vm1, %v1066_v40, 0 }
 0x126   :  { %v4618_v21 = vpop.eup %4617  ;;  %4372 = vmatmul.mubr.msk.bf16.gmra.mxu0 %vm1093_vm0, %v1332_v49  ;;  %v1068_v9 = vpack.c.bf16 %v4616_v16, %v4614_v47  ;;  %v5326_v16 = vld [vmem:[%s5865_s4] ss:$0 sm:$0xff] }
 0x127   :  { %v4620_v37 = vpop.eup %4619 }
 0x128   :  { %v1067_v24 = vpack.c.bf16 %v4620_v37, %v4618_v21  ;;  %v1334_v60 = vsel %vm1326_vm7, %v1068_v9, 0  ;;  %v1454_v39 = vsel %vm5147_vm1, %v1068_v9, 0 }
 0x12a   :  { %4355 = vmatprep.mubr.msk.bf16.mxu1 %vm1093_vm0, %v1067_v24  ;;  %v1333_v50 = vsel %vm5147_vm1, %v1067_v24, 0  ;;  %v5337_v24 = vsel %vm2052_vm14, 65537, %v4765_v52 }
 0x12b   :  { %4375 = vmatprep.mubr.msk.bf16.mxu0 %vm1093_vm0, %v1333_v50 }
 0x12d   :  { %4356 = vmatmul.mubr.msk.bf16.gmra.mxu1 %vm1093_vm0, %v1068_v9 }
 0x12e   :  { %4376 = vmatmul.mubr.msk.bf16.gmra.mxu0 %vm1093_vm0, %v1334_v60  ;;  %4383 = vmatprep.mubr.msk.bf16.mxu1 %vm1093_vm0, %v1447_v26 }
 0x135   :  { %4384 = vmatmul.mubr.msk.bf16.vlgmr.msra.gmra.mxu1 %vm1093_vm0, %v5207_v3 }
 0x136   :  { %4387 = vmatprep.mubr.msk.bf16.mxu1 %vm1093_vm0, %v1329_v5  ;;  %4420 = vmatpush3.bf16.msra.mxu1 %v4578_v51 }
 0x137   :  { %4421 = vmatprep.subr.bf16.mxu1 %v4580_v42 }
 0x13a   :  { %4422 = vmatpush3.bf16.msra.mxu1 %v4580_v42 }
 0x13d   :  { %4388 = vmatmul.mubr.msk.bf16.gmra.mxu1 %vm1093_vm0, %v1450_v27 }
 0x13e   :  { %4391 = vmatprep.mubr.msk.bf16.mxu1 %vm1093_vm0, %v1451_v28 }
 0x145   :  { %4392 = vmatmul.mubr.msk.bf16.gmra.mxu1 %vm1093_vm0, %v1332_v49 }
 0x146   :  { %4395 = vmatprep.mubr.msk.bf16.mxu1 %vm1093_vm0, %v1333_v50 }
 0x14d   :  { %4396 = vmatmul.mubr.msk.bf16.gmra.mxu1 %vm1093_vm0, %v1454_v39 }
 0x1d5   :  { %v4345_v32 = vpop.f32.mrf.mxu1 }
 0x1d6   :  { %v4365_v44 = vpop.f32.mrf.mxu0  ;;  %v1161_v9 = vadd.f32 %v4345_v32, %v5326_v16 }
 0x1d7   :  { %v1152_v29 = vpop.f32.mrf.mxu1  ;;  %v1732_v20 = vrot.slane %v4365_v44, 6 }
 0x1d8   :  { %v1529_v34 = vpop.f32.mrf.mxu0  ;;  %v1153_v50 = vadd.f32 %v5326_v16, %v1152_v29 }
 0x1d9   :  { %v4346_v41 = vpop.f32.mrf.mxu1  ;;  %v1730_v21 = vrot.slane %v1529_v34, 6 }
 0x1da   :  { %v4366_v33 = vpop.f32.mrf.mxu0  ;;  %v1164_v22 = vadd.f32 %v4346_v41, %v5326_v16 }
 0x1db   :  { %v1155_v55 = vpop.f32.mrf.mxu1  ;;  %v1733_v48 = vrot.slane %v4366_v33, 6 }
 0x1dc   :  { %v1532_v43 = vpop.f32.mrf.mxu0  ;;  %v1156_v60 = vadd.f32 %v5326_v16, %v1155_v55 }
 0x1dd   :  { %v4349_v56 = vpop.f32.mrf.mxu1  ;;  %v1731_v10 = vrot.slane %v1532_v43, 6  ;;  %v1759_v4 = vsel %vm1746_vm13, %v1732_v20, %v1733_v48 }
 0x1de   :  { %v5279_v31 = vpop.f32.mrf.mxu0  ;;  %v1766_v15 = vadd.f32 %v1759_v4, %v1164_v22  ;;  %v1177_v51 = vadd.f32 %v4349_v56, %v5326_v16 }
 0x1df   :  { %v1168_v36 = vpop.f32.mrf.mxu1  ;;  %v1761_v26 = vsel %vm1746_vm13, %v1730_v21, %v1731_v10  ;;  %v1760_v30 = vsel %vm1746_vm13, %v1731_v10, %v1732_v20  ;;  %v1736_v54 = vrot.slane %v5279_v31, 6 }
 0x1e0   :  { %v5281_v3 = vpop.f32.mrf.mxu0  ;;  %v1764_v44 = vadd.f32 %v1761_v26, %v1156_v60  ;;  %v1169_v33 = vadd.f32 %v5326_v16, %v1168_v36 }
 0x1e1   :  { %v5283_v57 = vpop.f32.mrf.mxu1  ;;  %v1734_v37 = vrot.slane %v5281_v3, 6 }
 0x1e2   :  { %v5285_v58 = vpop.f32.mrf.mxu0 }
 0x1e3   :  { %v5287_v61 = vpop.f32.mrf.mxu1  ;;  %v1737_v27 = vrot.slane %v5285_v58, 6  ;;  %v1758_v29 = vsel %vm1746_vm13, %v1733_v48, %v1734_v37  ;;  %v1765_v58 = vadd.f32 %v1760_v30, %v1161_v9 }
 0x1e4   :  { %v5289_v25 = vpop.f32.mrf.mxu0  ;;  %v1767_v36 = vadd.f32 %v1758_v29, %v1169_v33  ;;  %v1172_v4 = vadd.f32 %v5326_v16, %v5287_v61 }
 0x1e5   :  { %v5291_v59 = vpop.f32.mrf.mxu1  ;;  %v1735_v55 = vrot.slane %v5289_v25, 6  ;;  %v1755_v31 = vsel %vm1746_vm13, %v1736_v54, %v1737_v27  ;;  %v1180_v25 = vadd.f32 %v5283_v57, %v5326_v16 }
 0x1e6   :  { %v5293_v45 = vpop.f32.mrf.mxu0 }
 0x1e7   :  { %v5295_v63 = vpop.f32.mrf.mxu1  ;;  %v1770_v60 = vadd.f32 %v1755_v31, %v1180_v25  ;;  %v1757_v26 = vsel %vm1746_vm13, %v1734_v37, %v1735_v55 }
 0x1e8   :  { %v5297_v0 = vpop.f32.mrf.mxu0  ;;  %v1768_v29 = vadd.f32 %v1757_v26, %v1172_v4 }
 0x1e9   :  { %v5299_v8 = vpop.f32.mrf.mxu1  ;;  %v1738_v22 = vrot.slane %v5297_v0, 6  ;;  %v1756_v0 = vsel %vm1746_vm13, %v1735_v55, %v1736_v54 }
 0x1ea   :  { %v5301_v14 = vpop.f32.mrf.mxu0 }
 0x1eb   :  { %v5303_v5 = vpop.f32.mrf.mxu1  ;;  %v1741_v57 = vrot.slane %v5301_v14, 6  ;;  %v1185_v14 = vadd.f32 %v5326_v16, %v5295_v63  ;;  %v1196_v63 = vadd.f32 %v5299_v8, %v5326_v16 }
 0x1ec   :  { %v5305_v19 = vpop.f32.mrf.mxu0 }
 0x1ed   :  { %v5307_v2 = vpop.f32.mrf.mxu1 }
 0x1ee   :  { %v5309_v35 = vpop.f32.mrf.mxu0 }
 0x1ef   :  { %v5311_v62 = vpop.f32.mrf.mxu1 }
 0x1f0   :  { %v5313_v46 = vpop.f32.mrf.mxu0 }
 0x1f1   :  { %v5315_v6 = vpop.f32.mrf.mxu1 }
 0x1f2   :  { %v5318_v18 = vpop.f32.mrf.mxu0 }
 0x1f3   :  { %v5320_v40 = vpop.f32.mrf.mxu1  ;;  %v1745_v49 = vrot.slane %v5318_v18, 6 }
 0x1f4   :  { %v1580_v31 = vpop.f32.mrf.mxu0 }
 0x1f5   :  { %v4385_v47 = vpop.f32.mrf.mxu1  ;;  %v1762_v28 = vsel %vm1746_vm13, %v1745_v49, %v1730_v21  ;;  %v1743_v4 = vrot.slane %v1580_v31, 6 }
 0x1f6   :  { %v1781_v42 = vrot.slane %v4385_v47, 2  ;;  %v1763_v43 = vadd.f32 %v1762_v28, %v1153_v50 }
 0x1f7   :  { %v5331_v11 = vpop.f32.mrf.mxu1 }
 0x1f8   :  { %v1779_v34 = vrot.slane %v5331_v11, 2 }
 0x1f9   :  { %v4386_v38 = vpop.f32.mrf.mxu1 }
 0x1fa   :  { %v1782_v39 = vrot.slane %v4386_v38, 2  ;;  %v1193_v38 = vadd.f32 %v5291_v59, %v5326_v16  ;;  %v1754_v59 = vsel %vm1746_vm13, %v1737_v27, %v1738_v22 }
 0x1fb   :  { %v1670_v32 = vpop.f32.mrf.mxu1 }
 0x1fc   :  { %v1780_v41 = vrot.slane %v1670_v32, 2  ;;  %v1808_v3 = vsel %vm1795_vm15, %v1781_v42, %v1782_v39 }
 0x1fd   :  { %v4389_v56 = vpop.f32.mrf.mxu1  ;;  %v1814_v9 = vadd.f32 %v1808_v3, %v1765_v58  ;;  %v1188_v58 = vadd.f32 %v5326_v16, %v5303_v5 }
 0x1fe   :  { %v1809_v20 = vsel %vm1795_vm15, %v1780_v41, %v1781_v42  ;;  %v1810_v48 = vsel %vm1795_vm15, %v1779_v34, %v1780_v41  ;;  %v1740_v42 = vrot.slane %v5293_v45, 6  ;;  %v1785_v32 = vrot.slane %v4389_v56, 2 }
 0x1ff   :  { %v1812_v10 = vadd.f32 %v1810_v48, %v1763_v43  ;;  %v1813_v47 = vadd.f32 %v1809_v20, %v1764_v44  ;;  %v1683_v21 = vpop.f32.mrf.mxu1  ;;  %v1769_v45 = vadd.f32 %v1756_v0, %v1177_v51  ;;  %v1771_v43 = vadd.f32 %v1754_v59, %v1185_v14 }
 0x200   :  { %v1783_v50 = vrot.slane %v1683_v21, 2  ;;  %v1742_v51 = vrot.slane %v5313_v46, 6  ;;  %v1744_v21 = vrot.slane %v5309_v35, 6  ;;  %v1201_v0 = vadd.f32 %v5326_v16, %v5311_v62 }
 0x201   :  { %4621 = vtanh.f32 %v1812_v10  ;;  %v4390_v28 = vpop.f32.mrf.mxu1 }
 0x202   :  { %4623 = vtanh.f32 %v1813_v47  ;;  %v1807_v30 = vsel %vm1795_vm15, %v1782_v39, %v1783_v50  ;;  %v1786_v61 = vrot.slane %v4390_v28, 2  ;;  %v1739_v39 = vrot.slane %v5305_v19, 6 }
 0x203   :  { %v1815_v44 = vadd.f32 %v1807_v30, %v1766_v15  ;;  %v1686_v37 = vpop.f32.mrf.mxu1  ;;  %4625 = vtanh.f32 %v1814_v9  ;;  %v1751_v15 = vsel %vm1746_vm13, %v1740_v42, %v1741_v57  ;;  %v1209_v47 = vadd.f32 %v5307_v2, %v5326_v16 }
 0x204   :  { %v1784_v41 = vrot.slane %v1686_v37, 2  ;;  %v1804_v54 = vsel %vm1795_vm15, %v1785_v32, %v1786_v61  ;;  %v1774_v25 = vadd.f32 %v1751_v15, %v1196_v63  ;;  %v1753_v10 = vsel %vm1746_vm13, %v1738_v22, %v1739_v39 }
 0x205   :  { %4627 = vtanh.f32 %v1815_v44  ;;  %v4393_v33 = vpop.f32.mrf.mxu1  ;;  %v1818_v20 = vadd.f32 %v1804_v54, %v1769_v45  ;;  %v1772_v22 = vadd.f32 %v1753_v10, %v1188_v58  ;;  %v1750_v2 = vsel %vm1746_vm13, %v1741_v57, %v1742_v51  ;;  %v4582_v58 = vld [vmem:[%s5866_s5 + $0x20] sm:$0xff]  }
 0x206   :  { %v1805_v55 = vsel %vm1795_vm15, %v1784_v41, %v1785_v32  ;;  %v1806_v27 = vsel %vm1795_vm15, %v1783_v50, %v1784_v41  ;;  %v1789_v9 = vrot.slane %v4393_v33, 2  ;;  %v1747_v57 = vsel %vm1746_vm13, %v1744_v21, %v1745_v49 }
 0x207   :  { %v1816_v19 = vadd.f32 %v1806_v27, %v1767_v36  ;;  %v1817_v3 = vadd.f32 %v1805_v55, %v1768_v29  ;;  %v1699_v56 = vpop.f32.mrf.mxu1  ;;  %v1752_v36 = vsel %vm1746_vm13, %v1739_v39, %v1740_v42  ;;  %v1775_v44 = vadd.f32 %v1750_v2, %v1201_v0 }
 0x208   :  { %v1787_v48 = vrot.slane %v1699_v56, 2  ;;  %v1773_v30 = vadd.f32 %v1752_v36, %v1193_v38  ;;  %v1748_v37 = vsel %vm1746_vm13, %v1743_v4, %v1744_v21  ;;  %v1204_v33 = vadd.f32 %v5326_v16, %v5320_v40 }
 0x209   :  { %4629 = vtanh.f32 %v1816_v19  ;;  %v4394_v8 = vpop.f32.mrf.mxu1 }
 0x20a   :  { %4631 = vtanh.f32 %v1817_v3  ;;  %v1803_v5 = vsel %vm1795_vm15, %v1786_v61, %v1787_v48  ;;  %v1790_v46 = vrot.slane %v4394_v8, 2  ;;  %v1777_v3 = vadd.f32 %v1748_v37, %v1209_v47 }
 0x20b   :  { %v1819_v50 = vadd.f32 %v1803_v5, %v1770_v60  ;;  %v1702_v26 = vpop.f32.mrf.mxu1  ;;  %4633 = vtanh.f32 %v1818_v20  ;;  %v1212_v60 = vadd.f32 %v5315_v6, %v5326_v16  ;;  %v1749_v6 = vsel %vm1746_vm13, %v1742_v51, %v1743_v4 }
 0x20c   :  { %v1788_v28 = vrot.slane %v1702_v26, 2  ;;  %v1800_v61 = vsel %vm1795_vm15, %v1789_v9, %v1790_v46  ;;  %v1776_v19 = vadd.f32 %v1749_v6, %v1204_v33  ;;  %v2189_v6 = vsel %vm2173_vm10, 65537, %v4765_v52  ;;  %v4585_v33 = vld [vmem:[%s5868_s7 + $0x8] sm:$0xff]  }
 0x20d   :  { %4635 = vtanh.f32 %v1819_v50  ;;  %v4397_v42 = vpop.f32.mrf.mxu1  ;;  %v1822_v18 = vadd.f32 %v1800_v61, %v1773_v30  ;;  %v1778_v54 = vadd.f32 %v1747_v57, %v1212_v60  ;;  %v2076_v61 = vsel %vm2060_vm6, 65537, %v4765_v52 }
 0x20e   :  { %v4622_v35 = vpop.eup %4621  ;;  %v1801_v38 = vsel %vm1795_vm15, %v1788_v28, %v1789_v9  ;;  %v1802_v62 = vsel %vm1795_vm15, %v1787_v48, %v1788_v28  ;;  %v1793_v45 = vrot.slane %v4397_v42, 2  ;;  %vm4766_vm13 = vmmov 0  }
 0x20f   :  { %v4624_v32 = vpop.eup %4623  ;;  %v1820_v29 = vadd.f32 %v1802_v62, %v1771_v43  ;;  %v1821_v59 = vadd.f32 %v1801_v38, %v1772_v22  ;;  %v1715_v41 = vpop.f32.mrf.mxu1  ;;  %v4024_v38 = vcombine.low %v5064_v53, %v2076_v61  ;;  %v4025_v62 = vcombine.low %v2181_v23, %v5064_v53  ;;  %vm2833_vm14 = vmpackc.low %vm4766_vm13, %vm4766_vm13 }
 0x210   :  { %v1791_v14 = vrot.slane %v1715_v41, 2  ;;  %v5430_v49 = vpack.c.bf16 %v4624_v32, %v4622_v35  ;;  %v4626_v39 = vpop.eup %4625 }
 0x211   :  { %4637 = vtanh.f32 %v1820_v29  ;;  %v4398_v15 = vpop.f32.mrf.mxu1  ;;  %vm2108_vm7 = vcmp.ne.s16.totalorder %v4024_v38, 0  ;;  %vm2221_vm8 = vcmp.ne.s16.totalorder %v4025_v62, 0  ;;  %v5582_v38 = vsel %vm2833_vm14, 65537, %v4765_v52 }
 0x212   :  { %v4628_v55 = vpop.eup %4627  ;;  %4639 = vtanh.f32 %v1821_v59  ;;  %v1799_v27 = vsel %vm1795_vm15, %v1790_v46, %v1791_v14  ;;  %v1794_v43 = vrot.slane %v4398_v15, 2  ;;  %4403 = vmatprep.mubr.msk.bf16.mxu0 %vm1093_vm0, %v5430_v49  ;;  %v2109_v63 = vsel %vm5147_vm1, %v5430_v49, 0  ;;  %v5523_v15 = vld [vmem:[%s5868_s7 + $0x28] sm:$0xff]  }
 0x213   :  { %v1823_v56 = vadd.f32 %v1799_v27, %v1774_v25  ;;  %4423 = vmatprep.mubr.msk.bf16.mxu1 %vm1093_vm0, %v2109_v63  ;;  %v1718_v40 = vpop.f32.mrf.mxu1  ;;  %v1845_v16 = vpack.c.bf16 %v4628_v55, %v4626_v39  ;;  %4641 = vtanh.f32 %v1822_v18  ;;  %v2229_v41 = vsel %vm2221_vm8, %v5430_v49, 0  ;;  %v4583_v39 = vld [vmem:[%s5868_s7 + $0x18] sm:$0xff]  }
 0x214   :  { %v1796_v51 = vsel %vm1795_vm15, %v1793_v45, %v1794_v43  ;;  %v1811_v31 = vsel %vm1795_vm15, %v1794_v43, %v1779_v34  ;;  %v1792_v20 = vrot.slane %v1718_v40, 2  ;;  %v4020_v34 = vcombine.low %v5064_v53, %v5337_v24  ;;  %4459 = vmatprep.subr.bf16.mxu1 %v4583_v39 }
 0x215   :  { %4643 = vtanh.f32 %v1823_v56  ;;  %v1826_v48 = vadd.f32 %v1796_v51, %v1777_v3  ;;  %v1827_v25 = vadd.f32 %v1811_v31, %v1778_v54  ;;  %4404 = vmatmul.mubr.msk.bf16.vlgmr.msra.gmra.mxu0 %vm1093_vm0, %v1845_v16  ;;  %v5454_v10 = vsel %vm5147_vm1, %v1845_v16, 0  ;;  %v4584_v54 = vld [vmem:[%s5868_s7 + $0x10] sm:$0xff]  }
 0x216   :  { %v4630_v47 = vpop.eup %4629  ;;  %v1797_v8 = vsel %vm1795_vm15, %v1792_v20, %v1793_v45  ;;  %v1798_v11 = vsel %vm1795_vm15, %v1791_v14, %v1792_v20  ;;  %4424 = vmatmul.mubr.msk.bf16.vlgmr.msra.gmra.mxu1 %vm1093_vm0, %v5454_v10  ;;  %4440 = vmatpush3.bf16.msra.mxu0 %v5276_v13  ;;  %vm2104_vm2 = vcmp.ne.s16.totalorder %v4020_v34, 0  ;;  %v4029_v18 = vcombine.low %v2189_v6, %v5064_v53  ;;  %v4586_v45 = vld [vmem:[%s5868_s7] sm:$0xff]  }
 0x217   :  { %v4632_v36 = vpop.eup %4631  ;;  %4645 = vtanh.f32 %v1826_v48  ;;  %v1824_v5 = vadd.f32 %v1798_v11, %v1775_v44  ;;  %v1825_v46 = vadd.f32 %v1797_v8, %v1776_v19  ;;  %4441 = vmatprep.subr.bf16.mxu0 %v4582_v58  ;;  %4460 = vmatpush3.bf16.msra.mxu1 %v4583_v39 }
 0x218   :  { %4647 = vtanh.f32 %v1827_v25  ;;  %v1846_v21 = vpack.c.bf16 %v4632_v36, %v4630_v47  ;;  %v4634_v4 = vpop.eup %4633  ;;  %vm2225_vm11 = vcmp.ne.s16.totalorder %v4029_v18, 0  ;;  %4461 = vmatprep.subr.bf16.mxu1 %v4584_v54 }
 0x219   :  { %4649 = vtanh.f32 %v1824_v5 }
 0x21a   :  { %v4636_v9 = vpop.eup %4635  ;;  %4651 = vtanh.f32 %v1825_v46  ;;  %4407 = vmatprep.mubr.msk.bf16.mxu0 %vm1093_vm0, %v1846_v21  ;;  %v2111_v50 = vsel %vm5147_vm1, %v1846_v21, 0  ;;  %4442 = vmatpush3.bf16.msra.mxu0 %v4582_v58 }
 0x21b   :  { %4427 = vmatprep.mubr.msk.bf16.mxu1 %vm1093_vm0, %v2111_v50  ;;  %v1847_v13 = vpack.c.bf16 %v4636_v9, %v4634_v4  ;;  %4462 = vmatpush3.bf16.msra.mxu1 %v4584_v54 }
 0x21c   :  { %4479 = vmatprep.subr.bf16.mxu0 %v4585_v33  ;;  %4499 = vmatprep.subr.bf16.mxu1 %v5523_v15 }
 0x21d   :  { %4408 = vmatmul.mubr.msk.bf16.gmra.mxu0 %vm1093_vm0, %v1847_v13  ;;  %v2112_v24 = vsel %vm2104_vm2, %v1847_v13, 0  ;;  %v2232_v14 = vsel %vm5147_vm1, %v1847_v13, 0 }
 0x21e   :  { %v4638_v26 = vpop.eup %4637  ;;  %4428 = vmatmul.mubr.msk.bf16.gmra.mxu1 %vm1093_vm0, %v2112_v24 }
 0x21f   :  { %v4640_v22 = vpop.eup %4639 }
 0x220   :  { %v1848_v2 = vpack.c.bf16 %v4640_v22, %v4638_v26  ;;  %v4642_v28 = vpop.eup %4641 }
 0x222   :  { %v4644_v30 = vpop.eup %4643  ;;  %4411 = vmatprep.mubr.msk.bf16.mxu0 %vm1093_vm0, %v1848_v2  ;;  %v2113_v0 = vsel %vm5147_vm1, %v1848_v2, 0  ;;  %v2233_v7 = vsel %vm2225_vm11, %v1848_v2, 0 }
 0x223   :  { %4431 = vmatprep.mubr.msk.bf16.mxu1 %vm1093_vm0, %v2113_v0  ;;  %v1849_v12 = vpack.c.bf16 %v4644_v30, %v4642_v28 }
 0x224   :  { %v4646_v42 = vpop.eup %4645 }
 0x225   :  { %v4648_v35 = vpop.eup %4647  ;;  %4412 = vmatmul.mubr.msk.bf16.gmra.mxu0 %vm1093_vm0, %v1849_v12  ;;  %v2114_v60 = vsel %vm5147_vm1, %v1849_v12, 0  ;;  %v5572_v12 = vld [vmem:[%s5867_s6] ss:$0 sm:$0xff] }
 0x226   :  { %v4650_v57 = vpop.eup %4649  ;;  %4432 = vmatmul.mubr.msk.bf16.gmra.mxu1 %vm1093_vm0, %v2114_v60  ;;  %v1851_v37 = vpack.c.bf16 %v4648_v35, %v4646_v42 }
 0x227   :  { %v4652_v32 = vpop.eup %4651 }
 0x228   :  { %v1850_v44 = vpack.c.bf16 %v4652_v32, %v4650_v57  ;;  %v2116_v59 = vsel %vm2108_vm7, %v1851_v37, 0  ;;  %v2236_v49 = vsel %vm5147_vm1, %v1851_v37, 0 }
 0x22a   :  { %4415 = vmatprep.mubr.msk.bf16.mxu0 %vm1093_vm0, %v1850_v44  ;;  %v2115_v29 = vsel %vm5147_vm1, %v1850_v44, 0 }
 0x22b   :  { %4435 = vmatprep.mubr.msk.bf16.mxu1 %vm1093_vm0, %v2115_v29 }
 0x22d   :  { %4416 = vmatmul.mubr.msk.bf16.gmra.mxu0 %vm1093_vm0, %v1851_v37 }
 0x22e   :  { %4436 = vmatmul.mubr.msk.bf16.gmra.mxu1 %vm1093_vm0, %v2116_v59  ;;  %4443 = vmatprep.mubr.msk.bf16.mxu0 %vm1093_vm0, %v2229_v41 }
 0x235   :  { %4444 = vmatmul.mubr.msk.bf16.vlgmr.msra.gmra.mxu0 %vm1093_vm0, %v5454_v10 }
 0x236   :  { %4447 = vmatprep.mubr.msk.bf16.mxu0 %vm1093_vm0, %v2111_v50  ;;  %4480 = vmatpush3.bf16.msra.mxu0 %v4585_v33 }
 0x237   :  { %4481 = vmatprep.subr.bf16.mxu0 %v4586_v45 }
 0x23a   :  { %4482 = vmatpush3.bf16.msra.mxu0 %v4586_v45 }
 0x23d   :  { %4448 = vmatmul.mubr.msk.bf16.gmra.mxu0 %vm1093_vm0, %v2232_v14 }
 0x23e   :  { %4451 = vmatprep.mubr.msk.bf16.mxu0 %vm1093_vm0, %v2233_v7 }
 0x245   :  { %4452 = vmatmul.mubr.msk.bf16.gmra.mxu0 %vm1093_vm0, %v2114_v60 }
 0x246   :  { %4455 = vmatprep.mubr.msk.bf16.mxu0 %vm1093_vm0, %v2115_v29 }
 0x24d   :  { %4456 = vmatmul.mubr.msk.bf16.gmra.mxu0 %vm1093_vm0, %v2236_v49 }
 0x2d5   :  { %v4405_v55 = vpop.f32.mrf.mxu0 }
 0x2d6   :  { %v4425_v27 = vpop.f32.mrf.mxu1  ;;  %v1943_v62 = vadd.f32 %v4405_v55, %v5572_v12 }
 0x2d7   :  { %v1934_v43 = vpop.f32.mrf.mxu0  ;;  %v2514_v28 = vrot.slane %v4425_v27, 4 }
 0x2d8   :  { %v2311_v63 = vpop.f32.mrf.mxu1  ;;  %v1935_v32 = vadd.f32 %v5572_v12, %v1934_v43 }
 0x2d9   :  { %v4406_v19 = vpop.f32.mrf.mxu0  ;;  %v2512_v23 = vrot.slane %v2311_v63, 4 }
 0x2da   :  { %v4426_v3 = vpop.f32.mrf.mxu1  ;;  %v1946_v60 = vadd.f32 %v4406_v19, %v5572_v12 }
 0x2db   :  { %v1937_v56 = vpop.f32.mrf.mxu0  ;;  %v2515_v26 = vrot.slane %v4426_v3, 4 }
 0x2dc   :  { %v2314_v40 = vpop.f32.mrf.mxu1  ;;  %v1938_v44 = vadd.f32 %v5572_v12, %v1937_v56 }
 0x2dd   :  { %v4409_v16 = vpop.f32.mrf.mxu0  ;;  %v2513_v30 = vrot.slane %v2314_v40, 4  ;;  %v2541_v42 = vsel %vm2528_vm12, %v2514_v28, %v2515_v26 }
 0x2de   :  { %v5526_v58 = vpop.f32.mrf.mxu1  ;;  %v2548_v59 = vadd.f32 %v2541_v42, %v1946_v60  ;;  %v1959_v14 = vadd.f32 %v4409_v16, %v5572_v12 }
 0x2df   :  { %v1950_v51 = vpop.f32.mrf.mxu0  ;;  %v2543_v37 = vsel %vm2528_vm12, %v2512_v23, %v2513_v30  ;;  %v2542_v18 = vsel %vm2528_vm12, %v2513_v30, %v2514_v28  ;;  %v2518_v7 = vrot.slane %v5526_v58, 4 }
 0x2e0   :  { %v5528_v31 = vpop.f32.mrf.mxu1  ;;  %v2546_v54 = vadd.f32 %v2543_v37, %v1938_v44  ;;  %v1951_v27 = vadd.f32 %v5572_v12, %v1950_v51  ;;  %v2547_v56 = vadd.f32 %v2542_v18, %v1943_v62 }
 0x2e1   :  { %v4410_v20 = vpop.f32.mrf.mxu0  ;;  %v2516_v57 = vrot.slane %v5528_v31, 4 }
 0x2e2   :  { %v5530_v48 = vpop.f32.mrf.mxu1  ;;  %v1962_v31 = vadd.f32 %v4410_v20, %v5572_v12 }
 0x2e3   :  { %v5532_v25 = vpop.f32.mrf.mxu0  ;;  %v2519_v41 = vrot.slane %v5530_v48, 4  ;;  %v2540_v33 = vsel %vm2528_vm12, %v2515_v26, %v2516_v57 }
 0x2e4   :  { %v5534_v10 = vpop.f32.mrf.mxu1  ;;  %v2549_v51 = vadd.f32 %v2540_v33, %v1951_v27  ;;  %v1954_v28 = vadd.f32 %v5572_v12, %v5532_v25 }
 0x2e5   :  { %v5536_v47 = vpop.f32.mrf.mxu0  ;;  %v2517_v43 = vrot.slane %v5534_v10, 4  ;;  %v2537_v40 = vsel %vm2528_vm12, %v2518_v7, %v2519_v41 }
 0x2e6   :  { %v5538_v8 = vpop.f32.mrf.mxu1  ;;  %v2552_v42 = vadd.f32 %v2537_v40, %v1962_v31  ;;  %v1975_v62 = vadd.f32 %v5536_v47, %v5572_v12 }
 0x2e7   :  { %v5540_v11 = vpop.f32.mrf.mxu0  ;;  %v2539_v60 = vsel %vm2528_vm12, %v2516_v57, %v2517_v43  ;;  %v2522_v37 = vrot.slane %v5538_v8, 4 }
 0x2e8   :  { %v5542_v34 = vpop.f32.mrf.mxu1  ;;  %v2550_v18 = vadd.f32 %v2539_v60, %v1954_v28 }
 0x2e9   :  { %v5544_v36 = vpop.f32.mrf.mxu0  ;;  %v2520_v30 = vrot.slane %v5542_v34, 4  ;;  %v2538_v34 = vsel %vm2528_vm12, %v2517_v43, %v2518_v7 }
 0x2ea   :  { %v5546_v5 = vpop.f32.mrf.mxu1  ;;  %v2551_v8 = vadd.f32 %v2538_v34, %v1959_v14 }
 0x2eb   :  { %v5548_v46 = vpop.f32.mrf.mxu0  ;;  %v2523_v20 = vrot.slane %v5546_v5, 4  ;;  %v2536_v47 = vsel %vm2528_vm12, %v2519_v41, %v2520_v30  ;;  %v1967_v5 = vadd.f32 %v5572_v12, %v5540_v11  ;;  %v1978_v11 = vadd.f32 %v5544_v36, %v5572_v12 }
 0x2ec   :  { %v5550_v21 = vpop.f32.mrf.mxu1  ;;  %v1970_v43 = vadd.f32 %v5572_v12, %v5548_v46 }
 0x2ed   :  { %v5552_v4 = vpop.f32.mrf.mxu0  ;;  %v2553_v33 = vadd.f32 %v2536_v47, %v1967_v5 }
 0x2ee   :  { %v5554_v9 = vpop.f32.mrf.mxu1 }
 0x2ef   :  { %v5556_v50 = vpop.f32.mrf.mxu0 }
 0x2f0   :  { %v5558_v13 = vpop.f32.mrf.mxu1 }
 0x2f1   :  { %v5560_v24 = vpop.f32.mrf.mxu0  ;;  %v2524_v14 = vrot.slane %v5558_v13, 4 }
 0x2f2   :  { %v5562_v22 = vpop.f32.mrf.mxu1 }
 0x2f3   :  { %v5564_v2 = vpop.f32.mrf.mxu0  ;;  %v2527_v61 = vrot.slane %v5562_v22, 4 }
 0x2f5   :  { %v4445_v0 = vpop.f32.mrf.mxu0  ;;  %v2544_v6 = vsel %vm2528_vm12, %v2527_v61, %v2512_v23 }
 0x2f6   :  { %v2563_v49 = vrot.slane %v4445_v0, 4  ;;  %v2545_v63 = vadd.f32 %v2544_v6, %v1935_v32 }
 0x2f7   :  { %v5577_v35 = vpop.f32.mrf.mxu0 }
 0x2f8   :  { %v2561_v45 = vrot.slane %v5577_v35, 4  ;;  %v4075_v35 = vcombine.low %v5064_v53, %v5582_v38 }
 0x2f9   :  { %v4446_v29 = vpop.f32.mrf.mxu0 }
 0x2fa   :  { %v2564_v52 = vrot.slane %v4446_v29, 4  ;;  %vm5709_vm15 = vcmp.ne.s16.totalorder %v4075_v35, 0 }
 0x2fb   :  { %v2452_v39 = vpop.f32.mrf.mxu0 }
 0x2fc   :  { %v2562_v55 = vrot.slane %v2452_v39, 4  ;;  %v2589_v19 = vsel %vm2528_vm12, %v2563_v49, %v2564_v52 }
 0x2fd   :  { %v4449_v3 = vpop.f32.mrf.mxu0  ;;  %v2595_v0 = vadd.f32 %v2589_v19, %v2547_v56 }
 0x2fe   :  { %v2590_v16 = vsel %vm2528_vm12, %v2562_v55, %v2563_v49  ;;  %v2591_v58 = vsel %vm2528_vm12, %v2561_v45, %v2562_v55  ;;  %v2567_v29 = vrot.slane %v4449_v3, 4 }
 0x2ff   :  { %v2593_v48 = vadd.f32 %v2591_v58, %v2545_v63  ;;  %v2594_v10 = vadd.f32 %v2590_v16, %v2546_v54  ;;  %v2465_v26 = vpop.f32.mrf.mxu0  ;;  %v2362_v63 = vpop.f32.mrf.mxu1  ;;  %v1991_v16 = vadd.f32 %v5552_v4, %v5572_v12  ;;  %v2532_v4 = vsel %vm2528_vm12, %v2523_v20, %v2524_v14 }
 0x300   :  { %v2565_v23 = vrot.slane %v2465_v26, 4  ;;  %v2525_v31 = vrot.slane %v2362_v63, 4 }
 0x301   :  { %4653 = vtanh.f32 %v2593_v48  ;;  %v4450_v32 = vpop.f32.mrf.mxu0 }
 0x302   :  { %4655 = vtanh.f32 %v2594_v10  ;;  %v2588_v44 = vsel %vm2528_vm12, %v2564_v52, %v2565_v23  ;;  %v2568_v25 = vrot.slane %v4450_v32, 4  ;;  %v2521_v52 = vrot.slane %v5550_v21, 4 }
 0x303   :  { %v2596_v6 = vadd.f32 %v2588_v44, %v2548_v59  ;;  %v2468_v57 = vpop.f32.mrf.mxu0  ;;  %4657 = vtanh.f32 %v2595_v0  ;;  %v2533_v59 = vsel %vm2528_vm12, %v2522_v37, %v2523_v20 }
 0x304   :  { %v2566_v49 = vrot.slane %v2468_v57, 4  ;;  %v2585_v7 = vsel %vm2528_vm12, %v2567_v29, %v2568_v25  ;;  %v2556_v56 = vadd.f32 %v2533_v59, %v1978_v11  ;;  %v2535_v40 = vsel %vm2528_vm12, %v2520_v30, %v2521_v52  ;;  %v4588_v11 = vld [vmem:[%s5868_s7 + $0x20] sm:$0xff]  }
 0x305   :  { %4659 = vtanh.f32 %v2596_v6  ;;  %v4453_v39 = vpop.f32.mrf.mxu0  ;;  %v2599_v19 = vadd.f32 %v2585_v7, %v2551_v8  ;;  %v2534_v58 = vsel %vm2528_vm12, %v2521_v52, %v2522_v37  ;;  %v2554_v28 = vadd.f32 %v2535_v40, %v1970_v43 }
 0x306   :  { %v2586_v54 = vsel %vm2528_vm12, %v2566_v49, %v2567_v29  ;;  %v2587_v41 = vsel %vm2528_vm12, %v2565_v23, %v2566_v49  ;;  %v2571_v48 = vrot.slane %v4453_v39, 4  ;;  %v2555_v0 = vadd.f32 %v2534_v58, %v1975_v62 }
 0x307   :  { %v2597_v21 = vadd.f32 %v2587_v41, %v2549_v51  ;;  %v2598_v55 = vadd.f32 %v2586_v54, %v2550_v18  ;;  %v2481_v27 = vpop.f32.mrf.mxu0  ;;  %v2526_v51 = vrot.slane %v5554_v9, 4  ;;  %v1983_v23 = vadd.f32 %v5572_v12, %v5556_v50 }
 0x308   :  { %v2569_v3 = vrot.slane %v2481_v27, 4  ;;  %v1986_v49 = vadd.f32 %v5572_v12, %v5564_v2 }
 0x309   :  { %4661 = vtanh.f32 %v2597_v21  ;;  %v4454_v36 = vpop.f32.mrf.mxu0  ;;  %v2529_v20 = vsel %vm2528_vm12, %v2526_v51, %v2527_v61  ;;  %v2530_v34 = vsel %vm2528_vm12, %v2525_v31, %v2526_v51 }
 0x30a   :  { %4663 = vtanh.f32 %v2598_v55  ;;  %v2584_v46 = vsel %vm2528_vm12, %v2568_v25, %v2569_v3  ;;  %v2572_v13 = vrot.slane %v4454_v36, 4  ;;  %v2557_v25 = vadd.f32 %v2532_v4, %v1983_v23 }
 0x30b   :  { %v2600_v10 = vadd.f32 %v2584_v46, %v2552_v42  ;;  %v2484_v26 = vpop.f32.mrf.mxu0  ;;  %4665 = vtanh.f32 %v2599_v19  ;;  %v1994_v42 = vadd.f32 %v5560_v24, %v5572_v12  ;;  %v2531_v24 = vsel %vm2528_vm12, %v2524_v14, %v2525_v31 }
 0x30c   :  { %v2570_v30 = vrot.slane %v2484_v26, 4  ;;  %v2581_v60 = vsel %vm2528_vm12, %v2571_v48, %v2572_v13  ;;  %v2558_v54 = vadd.f32 %v2531_v24, %v1986_v49  ;;  %v2559_v41 = vadd.f32 %v2530_v34, %v1991_v16 }
 0x30d   :  { %4667 = vtanh.f32 %v2600_v10  ;;  %v4457_v32 = vpop.f32.mrf.mxu0  ;;  %v2603_v22 = vadd.f32 %v2581_v60, %v2555_v0  ;;  %v2560_v47 = vadd.f32 %v2529_v20, %v1994_v42  ;;  %v4767_v24 = vmov 0.0  }
 0x30e   :  { %v4654_v9 = vpop.eup %4653  ;;  %v2582_v62 = vsel %vm2528_vm12, %v2570_v30, %v2571_v48  ;;  %v2583_v50 = vsel %vm2528_vm12, %v2569_v3, %v2570_v30  ;;  %v2575_v5 = vrot.slane %v4457_v32, 4  ;;  %4519 = vmatprep.subr.mxu0 %v4767_v24 }
 0x30f   :  { %v4656_v44 = vpop.eup %4655  ;;  %v2601_v37 = vadd.f32 %v2583_v50, %v2553_v33  ;;  %v2602_v29 = vadd.f32 %v2582_v62, %v2554_v28  ;;  %v2497_v6 = vpop.f32.mrf.mxu0 }
 0x310   :  { %v2573_v57 = vrot.slane %v2497_v6, 4  ;;  %v5674_v61 = vpack.c.bf16 %v4656_v44, %v4654_v9  ;;  %v4658_v18 = vpop.eup %4657  ;;  %v4080_v9 = vcombine.low %v5582_v38, %v5064_v53  ;;  %v4149_v6 = vld [vmem:[%s5870_s9 + $0x10] sm:$0xff]  }
 0x311   :  { %4669 = vtanh.f32 %v2601_v37  ;;  %v4458_v52 = vpop.f32.mrf.mxu0  ;;  %v4150_v37 = vld [vmem:[%s5870_s9 + $0x18] sm:$0xff]  }
 0x312   :  { %v4660_v7 = vpop.eup %4659  ;;  %4671 = vtanh.f32 %v2602_v29  ;;  %v2580_v39 = vsel %vm2528_vm12, %v2572_v13, %v2573_v57  ;;  %v2576_v8 = vrot.slane %v4458_v52, 4  ;;  %4463 = vmatprep.mubr.msk.bf16.mxu1 %vm1093_vm0, %v5674_v61  ;;  %v2890_v59 = vsel %vm5147_vm1, %v5674_v61, 0  ;;  %v4148_v29 = vld [vmem:[%s5870_s9 + $0x8] sm:$0xff]  }
 0x313   :  { %v2604_v33 = vadd.f32 %v2580_v39, %v2556_v56  ;;  %4483 = vmatprep.mubr.msk.bf16.mxu0 %vm1093_vm0, %v2890_v59  ;;  %v2500_v2 = vpop.f32.mrf.mxu0  ;;  %v2626_v12 = vpack.c.bf16 %v4660_v7, %v4658_v18  ;;  %4673 = vtanh.f32 %v2603_v22  ;;  %vm3002_vm2 = vcmp.ne.s16.totalorder %v4080_v9, 0  ;;  %v4125_v18 = vld [vmem:[%s5870_s9] sm:$0xff]  }
 0x314   :  { %v2577_v21 = vsel %vm2528_vm12, %v2575_v5, %v2576_v8  ;;  %v2592_v55 = vsel %vm2528_vm12, %v2576_v8, %v2561_v45  ;;  %v2574_v27 = vrot.slane %v2500_v2, 4  ;;  %v4139_v22 = vunpack.c.h.bf16 %v4150_v37 }
 0x315   :  { %4675 = vtanh.f32 %v2604_v33  ;;  %v2607_v43 = vadd.f32 %v2577_v21, %v2559_v41  ;;  %v2608_v14 = vadd.f32 %v2592_v55, %v2560_v47  ;;  %4464 = vmatmul.mubr.msk.bf16.vlgmr.msra.gmra.mxu1 %vm1093_vm0, %v2626_v12  ;;  %v2891_v63 = vsel %vm5147_vm1, %v2626_v12, 0 }
 0x316   :  { %v4662_v19 = vpop.eup %4661  ;;  %v2578_v3 = vsel %vm2528_vm12, %v2574_v27, %v2575_v5  ;;  %v2579_v56 = vsel %vm2528_vm12, %v2573_v57, %v2574_v27  ;;  %4484 = vmatmul.mubr.msk.bf16.vlgmr.msra.gmra.mxu0 %vm1093_vm0, %v2891_v63  ;;  %4500 = vmatpush3.bf16.msra.mxu1 %v5523_v15  ;;  %v4131_v17 = vunpack.c.h.bf16 %v4148_v29  ;;  %v4138_v57 = vunpack.c.l.bf16 %v4150_v37 }
 0x317   :  { %v4664_v45 = vpop.eup %4663  ;;  %4677 = vtanh.f32 %v2607_v43  ;;  %v2605_v40 = vadd.f32 %v2579_v56, %v2557_v25  ;;  %v2606_v16 = vadd.f32 %v2578_v3, %v2558_v54  ;;  %4501 = vmatprep.subr.bf16.mxu1 %v4588_v11  ;;  %v3010_v25 = vsel %vm3002_vm2, %v5674_v61, 0  ;;  %4520 = vmatpush3.msra.mxu0 %v4139_v22 }
 0x318   :  { %4679 = vtanh.f32 %v2608_v14  ;;  %v2627_v36 = vpack.c.bf16 %v4664_v45, %v4662_v19  ;;  %v4666_v58 = vpop.eup %4665  ;;  %v4130_v61 = vunpack.c.l.bf16 %v4148_v29  ;;  %v4135_v47 = vunpack.c.h.bf16 %v4149_v6  ;;  %4521 = vmatprep.subr.mxu0 %v4767_v24 }
 0x319   :  { %4681 = vtanh.f32 %v2605_v40  ;;  %v4127_v49 = vunpack.c.h.bf16 %v4125_v18  ;;  %4522 = vmatpush3.msra.mxu0 %v4138_v57  ;;  %v4134_v5 = vunpack.c.l.bf16 %v4149_v6  ;;  %v4126_v52 = vunpack.c.l.bf16 %v4125_v18 }
 0x31a   :  { %v4668_v46 = vpop.eup %4667  ;;  %4683 = vtanh.f32 %v2606_v16  ;;  %4467 = vmatprep.mubr.msk.bf16.mxu1 %vm1093_vm0, %v2627_v36  ;;  %v2892_v1 = vsel %vm5147_vm1, %v2627_v36, 0  ;;  %4502 = vmatpush3.bf16.msra.mxu1 %v4588_v11 }
 0x31b   :  { %4487 = vmatprep.mubr.msk.bf16.mxu0 %vm1093_vm0, %v2892_v1  ;;  %v2628_v13 = vpack.c.bf16 %v4668_v46, %v4666_v58  ;;  %4530 = vmatprep.subr.mxu1 %v4767_v24 }
 0x31c   :  { %4523 = vmatprep.subr.mxu0 %v4767_v24 }
 0x31d   :  { %4468 = vmatmul.mubr.msk.bf16.gmra.mxu1 %vm1093_vm0, %v2628_v13  ;;  %v2893_v51 = vsel %vm5709_vm15, %v2628_v13, 0  ;;  %v3013_v53 = vsel %vm5147_vm1, %v2628_v13, 0  ;;  %4524 = vmatpush3.msra.mxu0 %v4135_v47  ;;  %v5791_v13 = vld [vmem:[%s5869_s8] ss:$0 sm:$0xff] }
 0x31e   :  { %v4670_v31 = vpop.eup %4669  ;;  %4488 = vmatmul.mubr.msk.bf16.gmra.mxu0 %vm1093_vm0, %v2893_v51  ;;  %4525 = vmatprep.subr.mxu0 %v4767_v24 }
 0x31f   :  { %v4672_v48 = vpop.eup %4671  ;;  %4526 = vmatpush3.msra.mxu0 %v4134_v5 }
 0x320   :  { %v2629_v10 = vpack.c.bf16 %v4672_v48, %v4670_v31  ;;  %v4674_v26 = vpop.eup %4673  ;;  %4541 = vmatprep.subr.mxu0 %v4767_v24 }
 0x322   :  { %v4676_v28 = vpop.eup %4675  ;;  %4471 = vmatprep.mubr.msk.bf16.mxu1 %vm1093_vm0, %v2629_v10  ;;  %v2894_v4 = vsel %vm5147_vm1, %v2629_v10, 0  ;;  %v3014_v38 = vsel %vm3002_vm2, %v2629_v10, 0 }
 0x323   :  { %4491 = vmatprep.mubr.msk.bf16.mxu0 %vm1093_vm0, %v2894_v4  ;;  %v2630_v30 = vpack.c.bf16 %v4676_v28, %v4674_v26 }
 0x324   :  { %v4678_v0 = vpop.eup %4677 }
 0x325   :  { %v4680_v23 = vpop.eup %4679  ;;  %4472 = vmatmul.mubr.msk.bf16.gmra.mxu1 %vm1093_vm0, %v2630_v30  ;;  %v2895_v60 = vsel %vm5147_vm1, %v2630_v30, 0 }
 0x326   :  { %v4682_v32 = vpop.eup %4681  ;;  %4492 = vmatmul.mubr.msk.bf16.gmra.mxu0 %vm1093_vm0, %v2895_v60  ;;  %v2632_v62 = vpack.c.bf16 %v4680_v23, %v4678_v0 }
 0x327   :  { %v4684_v42 = vpop.eup %4683 }
 0x328   :  { %v2631_v20 = vpack.c.bf16 %v4684_v42, %v4682_v32  ;;  %v2897_v44 = vsel %vm5709_vm15, %v2632_v62, 0  ;;  %v3017_v34 = vsel %vm5147_vm1, %v2632_v62, 0 }
 0x32a   :  { %4475 = vmatprep.mubr.msk.bf16.mxu1 %vm1093_vm0, %v2631_v20  ;;  %v2896_v50 = vsel %vm5147_vm1, %v2631_v20, 0  ;;  %vm3638_vm1 = vcmask 1041409  }
 0x32b   :  { %4495 = vmatprep.mubr.msk.bf16.mxu0 %vm1093_vm0, %v2896_v50 }
 0x32d   :  { %4476 = vmatmul.mubr.msk.bf16.gmra.mxu1 %vm1093_vm0, %v2632_v62 }
 0x32e   :  { %4496 = vmatmul.mubr.msk.bf16.gmra.mxu0 %vm1093_vm0, %v2897_v44  ;;  %4503 = vmatprep.mubr.msk.bf16.mxu1 %vm1093_vm0, %v3010_v25 }
 0x32f   :  { %4527 = vmatprep.mubr.msk.f32.mxu0 %vm4766_vm13, %v4767_v24 }
 0x335   :  { %4504 = vmatmul.mubr.msk.bf16.vlgmr.msra.gmra.mxu1 %vm1093_vm0, %v2891_v63 }
 0x336   :  { %4507 = vmatprep.mubr.msk.bf16.mxu1 %vm1093_vm0, %v2892_v1  ;;  %4531 = vmatpush3.msra.mxu1 %v4131_v17 }
 0x337   :  { %4532 = vmatprep.subr.mxu1 %v4767_v24 }
 0x338   :  { %4533 = vmatpush3.msra.mxu1 %v4130_v61 }
 0x339   :  { %4534 = vmatprep.subr.mxu1 %v4767_v24 }
 0x33a   :  { %4535 = vmatpush3.msra.mxu1 %v4127_v49 }
 0x33b   :  { %4536 = vmatprep.subr.mxu1 %v4767_v24 }
 0x33c   :  { %4537 = vmatpush3.msra.mxu1 %v4126_v52 }
 0x33d   :  { %4508 = vmatmul.mubr.msk.bf16.gmra.mxu1 %vm1093_vm0, %v3013_v53 }
 0x33e   :  { %4511 = vmatprep.mubr.msk.bf16.mxu1 %vm1093_vm0, %v3014_v38 }
 0x345   :  { %4512 = vmatmul.mubr.msk.bf16.gmra.mxu1 %vm1093_vm0, %v2895_v60 }
 0x346   :  { %4515 = vmatprep.mubr.msk.bf16.mxu1 %vm1093_vm0, %v2896_v50 }
 0x34d   :  { %4516 = vmatmul.mubr.msk.bf16.gmra.mxu1 %vm1093_vm0, %v3017_v34 }
 0x34e   :  { %4538 = vmatprep.mubr.msk.f32.mxu1 %vm4766_vm13, %v4767_v24 }
 0x3d5   :  { %v4465_v7 = vpop.f32.mrf.mxu1 }
 0x3d6   :  { %v4485_v39 = vpop.f32.mrf.mxu0  ;;  %v2724_v0 = vadd.f32 %v4465_v7, %v5791_v13 }
 0x3d7   :  { %v2715_v8 = vpop.f32.mrf.mxu1 }
 0x3d8   :  { %v3092_v59 = vpop.f32.mrf.mxu0  ;;  %v2716_v30 = vadd.f32 %v5791_v13, %v2715_v8 }
 0x3d9   :  { %v4466_v54 = vpop.f32.mrf.mxu1 }
 0x3da   :  { %v4486_v41 = vpop.f32.mrf.mxu0  ;;  %v2727_v32 = vadd.f32 %v4466_v54, %v5791_v13 }
 0x3db   :  { %v2718_v33 = vpop.f32.mrf.mxu1 }
 0x3dc   :  { %v3095_v2 = vpop.f32.mrf.mxu0  ;;  %v2719_v51 = vadd.f32 %v5791_v13, %v2718_v33  ;;  %v3296_v38 = vadd.f32 %v4485_v39, %v2727_v32 }
 0x3dd   :  { %v4469_v12 = vpop.f32.mrf.mxu1  ;;  %v3295_v42 = vadd.f32 %v3095_v2, %v2724_v0 }
 0x3de   :  { %v4489_v11 = vpop.f32.mrf.mxu0  ;;  %v3294_v28 = vadd.f32 %v3092_v59, %v2719_v51  ;;  %v2740_v6 = vadd.f32 %v4469_v12, %v5791_v13 }
 0x3df   :  { %v2731_v21 = vpop.f32.mrf.mxu1 }
 0x3e0   :  { %v3108_v55 = vpop.f32.mrf.mxu0  ;;  %v2732_v53 = vadd.f32 %v5791_v13, %v2731_v21 }
 0x3e1   :  { %v4470_v27 = vpop.f32.mrf.mxu1 }
 0x3e2   :  { %v5774_v43 = vpop.f32.mrf.mxu0  ;;  %v2743_v57 = vadd.f32 %v4470_v27, %v5791_v13  ;;  %v3297_v61 = vadd.f32 %v4486_v41, %v2732_v53 }
 0x3e3   :  { %v2734_v14 = vpop.f32.mrf.mxu1 }
 0x3e4   :  { %v3111_v63 = vpop.f32.mrf.mxu0  ;;  %v2735_v20 = vadd.f32 %v5791_v13, %v2734_v14  ;;  %v3300_v8 = vadd.f32 %v4489_v11, %v2743_v57 }
 0x3e5   :  { %v4473_v19 = vpop.f32.mrf.mxu1  ;;  %v3299_v18 = vadd.f32 %v3111_v63, %v2740_v6 }
 0x3e6   :  { %v5776_v3 = vpop.f32.mrf.mxu0  ;;  %v3298_v34 = vadd.f32 %v3108_v55, %v2735_v20  ;;  %v2756_v2 = vadd.f32 %v4473_v19, %v5791_v13 }
 0x3e7   :  { %v2747_v56 = vpop.f32.mrf.mxu1 }
 0x3e8   :  { %v3124_v35 = vpop.f32.mrf.mxu0  ;;  %v2748_v39 = vadd.f32 %v5791_v13, %v2747_v56 }
 0x3e9   :  { %v5778_v45 = vpop.f32.mrf.mxu1 }
 0x3ea   :  { %v5780_v40 = vpop.f32.mrf.mxu0  ;;  %v3301_v27 = vadd.f32 %v5774_v43, %v2748_v39  ;;  %v2759_v63 = vadd.f32 %v5778_v45, %v5791_v13 }
 0x3eb   :  { %v2750_v16 = vpop.f32.mrf.mxu1 }
 0x3ec   :  { %v3127_v36 = vpop.f32.mrf.mxu0  ;;  %v2751_v47 = vadd.f32 %v5791_v13, %v2750_v16  ;;  %v3304_v32 = vadd.f32 %v5776_v3, %v2759_v63 }
 0x3ed   :  { %v5782_v58 = vpop.f32.mrf.mxu1  ;;  %v3303_v56 = vadd.f32 %v3127_v36, %v2756_v2 }
 0x3ee   :  { %v5784_v46 = vpop.f32.mrf.mxu0  ;;  %v3302_v59 = vadd.f32 %v3124_v35, %v2751_v47 }
 0x3ef   :  { %v5786_v1 = vpop.f32.mrf.mxu1 }
 0x3f0   :  { %v5794_v31 = vpop.f32.mrf.mxu0  ;;  %v2764_v36 = vadd.f32 %v5791_v13, %v5786_v1 }
 0x3f1   :  { %v4478_v15 = vpop.f32.mrf.mxu1 }
 0x3f2   :  { %v4498_v26 = vpop.f32.mrf.mxu0  ;;  %v2775_v55 = vadd.f32 %v4478_v15, %v5791_v13  ;;  %v3305_v3 = vadd.f32 %v5780_v40, %v2764_v36 }
 0x3f3   :  { %v2766_v48 = vpop.f32.mrf.mxu1  ;;  %v3293_v9 = vadd.f32 %v4498_v26, %v2716_v30 }
 0x3f4   :  { %v2767_v11 = vadd.f32 %v5791_v13, %v2766_v48  ;;  %v3143_v16 = vpop.f32.mrf.mxu0  ;;  %v3308_v43 = vadd.f32 %v5784_v46, %v2775_v55 }
 0x3f5   :  { %v4505_v10 = vpop.f32.mrf.mxu1 }
 0x3f6   :  { %v3310_v23 = vadd.f32 %v4505_v10, %v3294_v28  ;;  %v2772_v10 = vadd.f32 %v5782_v58, %v5791_v13 }
 0x3f7   :  { %v5796_v4 = vpop.f32.mrf.mxu1 }
 0x3f8   :  { %4685 = vtanh.f32 %v3310_v23  ;;  %v3307_v48 = vadd.f32 %v3143_v16, %v2772_v10  ;;  %v3306_v23 = vadd.f32 %v5794_v31, %v2767_v11  ;;  %v3324_v58 = vadd.f32 %v3308_v43, %v5796_v4 }
 0x3f9   :  { %v4506_v60 = vpop.f32.mrf.mxu1 }
 0x3fa   :  { %v3311_v44 = vadd.f32 %v4506_v60, %v3295_v42 }
 0x3fb   :  { %v3233_v62 = vpop.f32.mrf.mxu1 }
 0x3fc   :  { %v3309_v50 = vadd.f32 %v3293_v9, %v3233_v62 }
 0x3fd   :  { %v4509_v25 = vpop.f32.mrf.mxu1 }
 0x3fe   :  { %4687 = vtanh.f32 %v3309_v50  ;;  %v3314_v22 = vadd.f32 %v4509_v25, %v3298_v34 }
 0x3ff   :  { %v3246_v37 = vpop.f32.mrf.mxu1  ;;  %4689 = vtanh.f32 %v3311_v44 }
 0x400   :  { %v3312_v29 = vadd.f32 %v3296_v38, %v3246_v37 }
 0x401   :  { %v4510_v17 = vpop.f32.mrf.mxu1 }
 0x402   :  { %4691 = vtanh.f32 %v3312_v29  ;;  %v3315_v52 = vadd.f32 %v4510_v17, %v3299_v18 }
 0x403   :  { %v3249_v49 = vpop.f32.mrf.mxu1  ;;  %4693 = vtanh.f32 %v3314_v22 }
 0x404   :  { %v3313_v5 = vadd.f32 %v3297_v61, %v3249_v49 }
 0x405   :  { %v4513_v7 = vpop.f32.mrf.mxu1  ;;  %v4686_v21 = vpop.eup %4685 }
 0x406   :  { %4695 = vtanh.f32 %v3313_v5  ;;  %v3318_v12 = vadd.f32 %v4513_v7, %v3302_v59 }
 0x407   :  { %v3262_v54 = vpop.f32.mrf.mxu1  ;;  %4697 = vtanh.f32 %v3315_v52 }
 0x408   :  { %v3316_v33 = vadd.f32 %v3300_v8, %v3262_v54 }
 0x409   :  { %v4514_v41 = vpop.f32.mrf.mxu1 }
 0x40a   :  { %4699 = vtanh.f32 %v3316_v33  ;;  %v3319_v26 = vadd.f32 %v4514_v41, %v3303_v56 }
 0x40b   :  { %v4688_v14 = vpop.eup %4687  ;;  %v3265_v35 = vpop.f32.mrf.mxu1  ;;  %4701 = vtanh.f32 %v3318_v12 }
 0x40c   :  { %v3341_v51 = vpack.c.bf16 %v4686_v21, %v4688_v14  ;;  %v3317_v19 = vadd.f32 %v3301_v27, %v3265_v35  ;;  %v4690_v28 = vpop.eup %4689 }
 0x40d   :  { %v4517_v15 = vpop.f32.mrf.mxu1 }
 0x40e   :  { %v3349_v30 = vunpack.c.l.bf16 %v3341_v51  ;;  %v3350_v0 = vunpack.c.h.bf16 %v3341_v51  ;;  %4703 = vtanh.f32 %v3317_v19  ;;  %v3322_v1 = vadd.f32 %v4517_v15, %v3306_v23 }
 0x40f   :  { %v4692_v45 = vpop.eup %4691  ;;  %v3278_v60 = vpop.f32.mrf.mxu1  ;;  %4705 = vtanh.f32 %v3319_v26 }
 0x410   :  { %v3365_v9 = vsel %vm1093_vm0, %v3349_v30, 0.0  ;;  %v3366_v42 = vsel %vm1093_vm0, %v3350_v0, 0.0  ;;  %v3342_v46 = vpack.c.bf16 %v4692_v45, %v4690_v28  ;;  %v3320_v20 = vadd.f32 %v3304_v32, %v3278_v60  ;;  %v4694_v50 = vpop.eup %4693 }
 0x411   :  { %v4518_v62 = vpop.f32.mrf.mxu1  ;;  %v3367_v31 = vadd.f32 %v3366_v42, %v3365_v9 }
 0x412   :  { %v3351_v44 = vunpack.c.l.bf16 %v3342_v46  ;;  %v3352_v25 = vunpack.c.h.bf16 %v3342_v46  ;;  %v3323_v13 = vadd.f32 %v4518_v62, %v3307_v48  ;;  %4707 = vtanh.f32 %v3320_v20 }
 0x413   :  { %v4696_v53 = vpop.eup %4695  ;;  %v3281_v38 = vpop.f32.mrf.mxu1  ;;  %4709 = vtanh.f32 %v3324_v58 }
 0x414   :  { %v3368_v4 = vsel %vm1093_vm0, %v3351_v44, 0.0  ;;  %v3343_v34 = vpack.c.bf16 %v4694_v50, %v4696_v53  ;;  %4711 = vtanh.f32 %v3323_v13  ;;  %v3321_v29 = vadd.f32 %v3305_v3, %v3281_v38  ;;  %v4698_v6 = vpop.eup %4697 }
 0x415   :  { %v3369_v37 = vadd.f32 %v3368_v4, %v3367_v31  ;;  %v3370_v22 = vsel %vm1093_vm0, %v3352_v25, 0.0  ;;  %4713 = vtanh.f32 %v3322_v1 }
 0x416   :  { %v3353_v17 = vunpack.c.l.bf16 %v3343_v34  ;;  %v3354_v18 = vunpack.c.h.bf16 %v3343_v34  ;;  %4715 = vtanh.f32 %v3321_v29  ;;  %v3583_v8 = vadd.f32 %v3370_v22, %v3368_v4 }
 0x417   :  { %v4700_v57 = vpop.eup %4699  ;;  %v3371_v61 = vadd.f32 %v3370_v22, %v3369_v37 }
 0x418   :  { %v3372_v47 = vsel %vm1093_vm0, %v3353_v17, 0.0  ;;  %v3344_v49 = vpack.c.bf16 %v4700_v57, %v4698_v6  ;;  %v4702_v5 = vpop.eup %4701  ;;  %v3374_v39 = vsel %vm1093_vm0, %v3354_v18, 0.0 }
 0x419   :  { %v3373_v40 = vadd.f32 %v3372_v47, %v3371_v61  ;;  %v3585_v12 = vadd.f32 %v3583_v8, %v3372_v47 }
 0x41a   :  { %v3355_v52 = vunpack.c.l.bf16 %v3344_v49  ;;  %v3356_v55 = vunpack.c.h.bf16 %v3344_v49 }
 0x41b   :  { %v4704_v7 = vpop.eup %4703  ;;  %v3375_v59 = vadd.f32 %v3374_v39, %v3373_v40  ;;  %v3587_v51 = vadd.f32 %v3585_v12, %v3374_v39 }
 0x41c   :  { %v3345_v54 = vpack.c.bf16 %v4702_v5, %v4704_v7  ;;  %v3376_v33 = vsel %vm1093_vm0, %v3355_v52, 0.0  ;;  %v4706_v2 = vpop.eup %4705  ;;  %v3378_v10 = vsel %vm1093_vm0, %v3356_v55, 0.0 }
 0x41d   :  { %v3377_v14 = vadd.f32 %v3376_v33, %v3375_v59  ;;  %v3486_v28 = vrot.slane %v3375_v59, 4  ;;  %v3589_v42 = vadd.f32 %v3587_v51, %v3376_v33 }
 0x41e   :  { %v3357_v41 = vunpack.c.l.bf16 %v3345_v54  ;;  %v3358_v21 = vunpack.c.h.bf16 %v3345_v54 }
 0x41f   :  { %v4708_v27 = vpop.eup %4707  ;;  %v3379_v0 = vadd.f32 %v3378_v10, %v3377_v14  ;;  %v3487_v9 = vadd.f32 %v3486_v28, %v3375_v59  ;;  %v3591_v38 = vadd.f32 %v3589_v42, %v3378_v10  ;;  %v4151_v28 = vld [vmem:[%s5870_s9 + $0x20] sm:$0xff]  }
 0x420   :  { %v4710_v63 = vpop.eup %4709  ;;  %v3386_v56 = vsel %vm1093_vm0, %v3357_v41, 0.0  ;;  %v3387_v11 = vsel %vm1093_vm0, %v3358_v21, 0.0  ;;  %v3346_v35 = vpack.c.bf16 %v4708_v27, %v4706_v2 }
 0x421   :  { %v4712_v16 = vpop.eup %4711  ;;  %v3388_v30 = vadd.f32 %v3387_v11, %v3386_v56  ;;  %v3380_v62 = vrot.slane %v3379_v0, 4  ;;  %v3488_v31 = vrot.slane %v3487_v9, 2  ;;  %v3592_v61 = vrot.slane %v3591_v38, 4  ;;  %v4152_v11 = vld [vmem:[%s5870_s9 + $0x28] sm:$0xff]  }
 0x422   :  { %v4714_v19 = vpop.eup %4713  ;;  %v3359_v26 = vunpack.c.l.bf16 %v3346_v35  ;;  %v3360_v15 = vunpack.c.h.bf16 %v3346_v35  ;;  %v3348_v48 = vpack.c.bf16 %v4710_v63, %v4712_v16 }
 0x423   :  { %v4716_v43 = vpop.eup %4715  ;;  %v3381_v34 = vadd.f32 %v3380_v62, %v3379_v0  ;;  %v3489_v57 = vadd.f32 %v3488_v31, %v3487_v9  ;;  %v3593_v8 = vadd.f32 %v3592_v61, %v3591_v38 }
 0x424   :  { %v3389_v45 = vsel %vm1093_vm0, %v3359_v26, 0.0  ;;  %v3391_v36 = vsel %vm1093_vm0, %v3360_v15, 0.0  ;;  %v3347_v23 = vpack.c.bf16 %v4714_v19, %v4716_v43  ;;  %v3363_v50 = vunpack.c.l.bf16 %v3348_v48 }
 0x425   :  { %v3390_v60 = vadd.f32 %v3389_v45, %v3388_v30  ;;  %v3604_v20 = vadd.f32 %v3391_v36, %v3389_v45  ;;  %v3364_v13 = vunpack.c.h.bf16 %v3348_v48  ;;  %v3382_v47 = vrot.slane %v3381_v34, 2 }
 0x426   :  { %v3361_v32 = vunpack.c.l.bf16 %v3347_v23  ;;  %v3362_v58 = vunpack.c.h.bf16 %v3347_v23  ;;  %v3397_v37 = vsel %vm1093_vm0, %v3363_v50, 0.0  ;;  %v3490_v39 = vrot.slane %v3489_v57, 1 }
 0x427   :  { %v3392_v46 = vadd.f32 %v3391_v36, %v3390_v60  ;;  %v3399_v17 = vsel %vm1093_vm0, %v3364_v13, 0.0  ;;  %v3383_v54 = vadd.f32 %v3382_v47, %v3381_v34  ;;  %v3594_v56 = vrot.slane %v3593_v8, 2 }
 0x428   :  { %v3393_v44 = vsel %vm1093_vm0, %v3361_v32, 0.0  ;;  %v3395_v53 = vsel %vm1093_vm0, %v3362_v58, 0.0  ;;  %v3491_v55 = vadd.f32 %v3490_v39, %v3489_v57  ;;  %v4147_v26 = vunpack.c.h.bf16 %v4152_v11 }
 0x429   :  { %v3394_v25 = vadd.f32 %v3393_v44, %v3392_v46  ;;  %v3606_v1 = vadd.f32 %v3604_v20, %v3393_v44  ;;  %v3384_v14 = vrot.slane %v3383_v54, 1  ;;  %v3595_v15 = vadd.f32 %v3594_v56, %v3593_v8  ;;  %v4123_v44 = vld [vmem:[%s5871_s10] ss:$0 sm:$0xff] }
 0x42a   :  { %v4146_v30 = vunpack.c.l.bf16 %v4152_v11  ;;  %v4143_v45 = vunpack.c.h.bf16 %v4151_v28  ;;  %v4142_v48 = vunpack.c.l.bf16 %v4151_v28 }
 0x42b   :  { %v3396_v3 = vadd.f32 %v3395_v53, %v3394_v25  ;;  %v3608_v4 = vadd.f32 %v3606_v1, %v3395_v53  ;;  %v3385_v19 = vadd.f32 %v3384_v14, %v3383_v54  ;;  %v3596_v36 = vrot.slane %v3595_v15, 1 }
 0x42d   :  { %v3507_v29 = vrot.slane %v3396_v3, 4  ;;  %v3398_v6 = vadd.f32 %v3397_v37, %v3396_v3  ;;  %v3610_v22 = vadd.f32 %v3608_v4, %v3397_v37  ;;  %v3597_v60 = vadd.f32 %v3596_v36, %v3595_v15 }
 0x42f   :  { %v3508_v18 = vadd.f32 %v3507_v29, %v3396_v3  ;;  %v3400_v49 = vadd.f32 %v3399_v17, %v3398_v6  ;;  %v3612_v40 = vadd.f32 %v3610_v22, %v3399_v17 }
 0x431   :  { %v3509_v5 = vrot.slane %v3508_v18, 2  ;;  %v3401_v52 = vrot.slane %v3400_v49, 4  ;;  %v3613_v7 = vrot.slane %v3612_v40, 4 }
 0x433   :  { %v3510_v59 = vadd.f32 %v3509_v5, %v3508_v18  ;;  %v3402_v33 = vadd.f32 %v3401_v52, %v3400_v49  ;;  %v3614_v2 = vadd.f32 %v3613_v7, %v3612_v40 }
 0x435   :  { %v3511_v12 = vrot.slane %v3510_v59, 1  ;;  %v3403_v41 = vrot.slane %v3402_v33, 2  ;;  %v3615_v21 = vrot.slane %v3614_v2, 2 }
 0x437   :  { %v3512_v27 = vadd.f32 %v3511_v12, %v3510_v59  ;;  %v3404_v63 = vadd.f32 %v3403_v41, %v3402_v33  ;;  %v3616_v51 = vadd.f32 %v3615_v21, %v3614_v2 }
 0x439   :  { %v3714_v35 = vsel %vm3638_vm1, %v3512_v27, %v3491_v55  ;;  %v3405_v16 = vrot.slane %v3404_v63, 1  ;;  %v3617_v0 = vrot.slane %v3616_v51, 1 }
 0x43a   :  { %4539 = vmatmul.mubr.msk.f32.vlgmr.msra.gmra.mxu1 %vm1093_vm0, %v3714_v35 }
 0x43b   :  { %v3406_v10 = vadd.f32 %v3405_v16, %v3404_v63  ;;  %v3618_v23 = vadd.f32 %v3617_v0, %v3616_v51 }
 0x43d   :  { %v3639_v43 = vsel %vm3638_vm1, %v3406_v10, %v3385_v19  ;;  %v3798_v32 = vsel %vm3638_vm1, %v3618_v23, %v3597_v60 }
 0x43e   :  { %4528 = vmatmul.mubr.msk.f32.vlgmr.msra.gmra.mxu0 %vm1093_vm0, %v3639_v43 }
 0x43f   :  { %4542 = vmatpush3.msra.mxu0 %v4147_v26  ;;  %4549 = vmatprep.mubr.msk.f32.mxu0 %vm4766_vm13, %v4767_v24 }
 0x440   :  { %4543 = vmatprep.subr.mxu0 %v4767_v24 }
 0x441   :  { %4544 = vmatpush3.msra.mxu0 %v4146_v30 }
 0x442   :  { %4545 = vmatprep.subr.mxu0 %v4767_v24 }
 0x443   :  { %4546 = vmatpush3.msra.mxu0 %v4143_v45 }
 0x444   :  { %4547 = vmatprep.subr.mxu0 %v4767_v24 }
 0x445   :  { %4548 = vmatpush3.msra.mxu0 %v4142_v48 }
 0x446   :  { %4550 = vmatmul.mubr.msk.f32.vlgmr.msra.gmra.mxu0 %vm1093_vm0, %v3798_v32 }
 0x4fa   :  { %v3783_v58 = vpop.f32.mrf.mxu1 }
 0x4fc   :  { %v4540_v9 = vpop.f32.mrf.mxu1 }
 0x4fe   :  { %v3708_v42 = vpop.f32.mrf.mxu0 }
 0x4ff   :  { %v3784_v20 = vadd.f32 %v3783_v58, %v3708_v42 }
 0x500   :  { %v4529_v46 = vpop.f32.mrf.mxu0 }
 0x506   :  { %v3867_v62 = vpop.f32.mrf.mxu0 }
 0x507   :  { %v3871_v50 = vadd.f32 %v3867_v62, %v3784_v20 }
 0x508   :  { %v4551_v25 = vpop.f32.mrf.mxu0 }
 0x509   :  { %v3872_v24 = vmul.f32 0.015625, %v3871_v50 }
 0x50b   :  { %v3880_v1 = vadd.f32 %v4123_v44, %v3872_v24 }
 0x50d   :  { %3882 = vst.msk [vmem:[#allocation5] sm:$0x3] %vm3881_vm3, %v3880_v1 }
 0x50e   :  { %4748 = shalt.err (!%p4745_p9)
}
 0x50f   :  { %3892 = dma.vmem_to_hbm [thread:$0]  %s3890_s20, 32, %s5872_s11, [#allocation4]  }
 0x510   :  { %4759 = dma.done.wait [#allocation4], 32  }
 0x511   :  { %4760 = vsyncadd [#allocation4], 4294967264 }
 0x512   :  { %3896 = vsyncpa [#allocation3], 1 }
 0x513   :  { %3897 = vsyncpa [#allocation4], 1 }

</bundles_post_ra>
